<compile_context>
chip_gen: v6e
topology: v6e:2x2x1
jax: 0.10.0
libtpu: 0.0.40
codegen_flags: <defaults>
</compile_context>

<pallas_src>
import functools
import math

import numpy as np
import jax
import jax.numpy as jnp
from jax.experimental import pallas as pl
from jax.experimental.pallas import tpu as pltpu


# ----------------------------------------------------------------------------- host ----
def compute_s4d_conv_kernel(log_dt, c_re, c_im, log_a_real, a_imag, L):
    """S4DKernel.forward(L): parameter-only complex Vandermonde contraction (host/numpy)."""
    log_dt = np.asarray(log_dt, np.float64)
    c = np.asarray(c_re, np.float64) + 1j * np.asarray(c_im, np.float64)        # (H, N2)
    a = -np.exp(np.asarray(log_a_real, np.float64)) + 1j * np.asarray(a_imag, np.float64)
    dt = np.exp(log_dt)                                                          # (H,)
    dt_a = a * dt[:, None]                                                       # (H, N2)
    vand = np.exp(dt_a[:, :, None] * np.arange(L))                               # (H, N2, L)
    c2 = c * (np.exp(dt_a) - 1.0) / a                                            # (H, N2)
    k = 2.0 * np.einsum("hn,hnl->hl", c2, vand).real                             # (H, L)
    return jnp.asarray(k, dtype=jnp.float32)


def choose_batch_tile(B, d_model, lane_cap=1024):
    """Pick the batch tile bt (batch rows packed on the lane axis per grid step).

    Preference: bt divides B, bt*d_model <= lane_cap, bt*d_model a multiple of 128 if
    possible (lane-dense vregs / MXU tiles), otherwise the largest candidate.
    Generation notes: cap the lane width ~512 on v7x (64 MiB VMEM) and keep B/bt >= 2 so
    the "parallel" batch axis can split across its two TensorCores; 128/256 multiples are
    the sweet spot on v5e/v6e.  bt is capped at 4 because the block-diagonal mixing
    weights scale as (bt*d_model)^2 (work on zeros grows with bt).
    """
    cands = [c for c in (4, 2, 1) if B % c == 0 and c * d_model <= lane_cap]
    if not cands:
        return 1
    for c in cands:
        if (c * d_model) % 128 == 0:
            return c
    return cands[0]


def prepare_kernel_params(nat, *, L, bt, d_output):
    """Turn 'natural' (PyTorch-shaped) parameters into kernel-ready operands.

    All parameter-only (data-independent) host work:
      - half-spectrum real DFT / inverse-DFT matrices of length 2L (conjugate symmetry
        folded into the inverse weights; frequency bins padded to a multiple of 8 and the
        forward/inverse pairs stacked for single fused matmuls), cast to bf16
      - per-layer half-spectrum kernels Khat, pre-tiled across the batch tile (f32: used
        only in the pointwise complex product on the VPU)
      - block-diagonal (over the batch tile) GLU / decoder / LayerNorm-averaging matrices
      - batch-tiled bias / scale vectors
    """
    nat_np = [np.asarray(a, dtype=np.float64) for a in nat]
    (w_enc, b_enc, k_all, d_all, w_out_all, b_out_all,
     gamma_all, beta_all, w_dec, b_dec) = nat_np
    n_layers, H, _ = k_all.shape
    M = 2 * L
    nbins = L + 1                                            # rfft bins of a length-2L signal
    nbins_pad = ((nbins + 7) // 8) * 8                       # 8-aligned sublane slices
    d_out_pad = ((max(d_output, 1) + 127) // 128) * 128      # lane-dense output store

    # Half-spectrum real DFT.  Forward: U[j] = (fr@u)[j] + i (fi@u)[j], j = 0..L.
    # Inverse (first L samples, real, symmetry weights w folded in): y = gr@Pr + gi@Pi.
    j = np.arange(nbins, dtype=np.float64)[:, None]
    t = np.arange(L, dtype=np.float64)[None, :]
    ang = 2.0 * np.pi * j * t / M                            # (nbins, L)
    fr, fi = np.cos(ang), -np.sin(ang)
    w = np.full((nbins,), 2.0); w[0] = 1.0; w[-1] = 1.0      # conjugate-symmetry weights
    gr = (w[None, :] * np.cos(ang.T)) / M                    # (L, nbins)
    gi = (-w[None, :] * np.sin(ang.T)) / M
    pad = nbins_pad - nbins
    fr = np.pad(fr, ((0, pad), (0, 0))); fi = np.pad(fi, ((0, pad), (0, 0)))
    gr = np.pad(gr, ((0, 0), (0, pad))); gi = np.pad(gi, ((0, 0), (0, pad)))
    f_stack = np.concatenate([fr, fi], axis=0)               # (2*nbins_pad, L)
    g_stack = np.concatenate([gr, gi], axis=1)               # (L, 2*nbins_pad)

    # Per-layer half-spectrum kernels, pre-tiled across the batch tile on the lane axis.
    khat = np.fft.rfft(k_all, n=M, axis=-1)                  # (n_layers, H, nbins)
    khat = np.pad(khat, ((0, 0), (0, 0), (0, pad)))          # (n_layers, H, nbins_pad)
    kr_all = np.tile(khat.real.transpose(0, 2, 1), (1, 1, bt))   # (n_layers, nbins_pad, bt*H)
    ki_all = np.tile(khat.imag.transpose(0, 2, 1), (1, 1, bt))

    eye_bt = np.eye(bt, dtype=np.float64)

    def tile_vec(v):                     # (H,) -> (1, bt*H), lane order = b*H + c
        return np.tile(np.asarray(v, np.float64).reshape(1, -1), (1, bt))

    def blk(mat):                        # block-diagonal over the batch tile
        return np.kron(eye_bt, mat)

    wv_blk = np.stack([blk(w_out_all[l][:, :H]) for l in range(n_layers)])   # value half
    wg_blk = np.stack([blk(w_out_all[l][:, H:]) for l in range(n_layers)])   # gate half
    bv_t = np.stack([tile_vec(b_out_all[l][:H]) for l in range(n_layers)])
    bg_t = np.stack([tile_vec(b_out_all[l][H:]) for l in range(n_layers)])
    d_t = np.stack([tile_vec(d_all[l]) for l in range(n_layers)])
    gamma_t = np.stack([tile_vec(gamma_all[l]) for l in range(n_layers)])
    beta_t = np.stack([tile_vec(beta_all[l]) for l in range(n_layers)])

    # Per-segment LayerNorm averaging operator (block-diag of ones(H,H)/H) -- kept f32.
    s_avg = blk(np.ones((H, H), np.float64) / H)

    # Padded, block-diagonal decoder.
    w_dec_pad = np.zeros((H, d_out_pad), np.float64); w_dec_pad[:, :d_output] = w_dec
    b_dec_pad = np.zeros((d_out_pad,), np.float64);   b_dec_pad[:d_output] = b_dec
    w_dec_blk = blk(w_dec_pad)
    b_dec_t = tile_vec(b_dec_pad)

    f32 = lambda a: jnp.asarray(a, jnp.float32)
    bf16 = lambda a: jnp.asarray(a, jnp.bfloat16)

    weights = (
        bf16(f_stack), bf16(g_stack),                 # DFT matrices (MXU operands)
        f32(kr_all), f32(ki_all), f32(d_t),           # spectral kernels (VPU pointwise) + D
        bf16(wv_blk), bf16(wg_blk),                   # GLU block-diag weights (MXU)
        f32(bv_t), f32(bg_t), f32(gamma_t), f32(beta_t),
        f32(s_avg),                                   # LN averaging (kept f32 for stability)
        bf16(w_dec_blk), f32(b_dec_t),
    )
    meta = dict(nbins_pad=nbins_pad, d_out_pad=d_out_pad)
    return weights, meta


# ------------------------------------------------------------------------ Pallas kernel ----
def s4_forward_kernel(h_ref, f_ref, g_ref,
                      kr_ref, ki_ref, d_ref,
                      wv_ref, wg_ref, bv_ref, bg_ref,
                      gamma_ref, beta_ref,
                      s_avg_ref, w_dec_ref, b_dec_ref,
                      out_ref,
                      *, n_layers, nbins_pad):
    f32, bf16 = jnp.float32, jnp.bfloat16

    h = h_ref[0]                                             # (L, bt*H) f32, pre-packed encoder output
    L = h.shape[0]

    # loop-invariant operands (hoisted loads)
    f_stack = f_ref[...]                                     # (2*nbins_pad, L)  bf16
    g_stack = g_ref[...]                                     # (L, 2*nbins_pad)  bf16
    s_avg = s_avg_ref[...]                                   # (bt*H, bt*H)      f32

    def layer_body(l, h):
        u = h
        # --- S4D causal depthwise conv along L on the MXU via a half-spectrum real DFT
        #     of length 2L:  y = IDFT_L( DFT_{2L}(u) * Khat )  per channel (equivalent to
        #     the rfft(n=2L)/irfft[..., :L] path in S4D.forward).  One fused forward
        #     matmul, f32 complex pointwise product, one fused inverse matmul. ---
        uf = jnp.dot(f_stack, u.astype(bf16), preferred_element_type=f32)   # (2*nbins_pad, btH)
        ur = uf[:nbins_pad]                                  # 8-aligned sublane slices
        ui = uf[nbins_pad:]
        kr = kr_ref[l]                                       # (nbins_pad, btH) f32, pre-tiled
        ki = ki_ref[l]
        p = jnp.concatenate([ur * kr - ui * ki,
                             ur * ki + ui * kr], axis=0)     # (2*nbins_pad, btH) f32
        y = jnp.dot(g_stack, p.astype(bf16), preferred_element_type=f32)    # (L, btH)

        # D skip connection + GELU (tanh form -> EUP slot; |err| vs exact erf ~1e-3).
        y = y + u * d_ref[l]
        y = 0.5 * y * (1.0 + jnp.tanh(0.7978845608028654 * (y + 0.044715 * y * y * y)))
        # TODO(synk): DropoutNd / nn.Dropout layers are identity at inference; not modeled.

        # output_linear: Conv1d(H -> 2H, k=1) + GLU as two lane-dense block-diagonal
        # bf16 matmuls (value half / gate half), f32 accumulation.
        yb = y.astype(bf16)
        val = jnp.dot(yb, wv_ref[l], preferred_element_type=f32) + bv_ref[l]
        gate = jnp.dot(yb, wg_ref[l], preferred_element_type=f32) + bg_ref[l]
        z = val * jax.nn.sigmoid(gate)

        # residual + post-norm LayerNorm over d_model, per batch segment.  Mean and E[x^2]
        # come from a single f32 block-diagonal averaging matmul (var = E[x^2] - mu^2).
        hres = z + u
        stats = jnp.dot(jnp.concatenate([hres, hres * hres], axis=0), s_avg,
                        preferred_element_type=f32)          # (2L, btH)
        mu = stats[:L]
        var = stats[L:] - mu * mu
        return (hres - mu) * jax.lax.rsqrt(var + 1e-5) * gamma_ref[l] + beta_ref[l]

    # Unrolled for small static depth (LLO visibility across layer boundaries); rolled
    # fori_loop with dynamic per-layer weight indexing for deep models.
    h = jax.lax.fori_loop(0, n_layers, layer_body, h, unroll=(n_layers <= 8))

    # mean pool over L, padded block-diagonal decoder, one lane-dense full-width store.
    pooled = jnp.mean(h, axis=0, keepdims=True)              # (1, bt*H)
    out = jnp.dot(pooled.astype(bf16), w_dec_ref[...],
                  preferred_element_type=f32) + b_dec_ref[...]   # (1, bt*d_out_pad)
    out_ref[0] = out


def s4_model_forward(x, nat_params, kweights, meta, *, n_layers, d_output, bt,
                     single_buffer_weights=True):
    w_enc = jnp.asarray(nat_params[0], jnp.float32)
    b_enc = jnp.asarray(nat_params[1], jnp.float32)
    B, L, _ = x.shape
    H = w_enc.shape[1]
    assert B % bt == 0
    nb = B // bt
    nbins_pad = meta["nbins_pad"]
    d_out_pad = meta["d_out_pad"]

    # Encoder Linear as a plain XLA GEMM (d_input is tiny -> wasteful on the in-kernel MXU);
    # pack bt batch rows onto the lane axis -> (nb, L, bt*H), lane order b*H + c.
    h = jnp.einsum("bld,dh->blh", x.astype(jnp.float32), w_enc) + b_enc
    h = h.reshape(nb, bt, L, H).transpose(0, 2, 1, 3).reshape(nb, L, bt * H)

    kernel = functools.partial(s4_forward_kernel, n_layers=n_layers, nbins_pad=nbins_pad)

    def weight_spec(arr):
        nd = arr.ndim
        if single_buffer_weights:
            # loop-invariant weights: single VMEM buffer instead of the default double buffer
            return pl.BlockSpec(arr.shape, lambda i, _nd=nd: (0,) * _nd,
                                pipeline_mode=pl.Buffered(1))
        return pl.BlockSpec(arr.shape, lambda i, _nd=nd: (0,) * _nd)

    # Explicit VMEM budget from the actual weight + block footprint (clamped to a range
    # that is valid on v5e/v6e/v7x).
    weight_bytes = sum(int(np.prod(w.shape)) * w.dtype.itemsize for w in kweights)
    block_bytes = (L * bt * H + bt * d_out_pad) * 4
    vmem_limit = int(2 * weight_bytes + 8 * block_bytes) + (8 << 20)
    vmem_limit = min(max(vmem_limit, 32 << 20), 64 << 20)

    out = pl.pallas_call(
        kernel,
        out_shape=jax.ShapeDtypeStruct((nb, 1, bt * d_out_pad), jnp.float32),
        grid=(nb,),
        in_specs=[pl.BlockSpec((1, L, bt * H), lambda i: (i, 0, 0))]
                 + [weight_spec(w) for w in kweights],
        out_specs=pl.BlockSpec((1, 1, bt * d_out_pad), lambda i: (i, 0, 0)),
        compiler_params=pltpu.CompilerParams(
            dimension_semantics=("parallel",),       # batch tiles are independent
            vmem_limit_bytes=vmem_limit),
    )(h, *kweights)

    # lane order within a block is b*d_out_pad + j -> plain reshape unpacks the batch.
    return out.reshape(B, d_out_pad)[:, :d_output]           # (B, d_output)


# ----------------------------------------------------------------------- JAX reference ----
def s4_model_reference(x, nat, *, n_layers):
    (w_enc, b_enc, k_all, d_all, w_out_all, b_out_all,
     gamma_all, beta_all, w_dec, b_dec) = nat
    h = x @ w_enc + b_enc
    B, L, H = h.shape
    for l in range(n_layers):
        u = h
        k = k_all[l]                                                  # (H, L)
        y = jnp.zeros_like(u)
        for m in range(L):                                            # causal depthwise conv
            shifted = jnp.pad(u, ((0, 0), (m, 0), (0, 0)))[:, :L, :]
            y = y + shifted * k[:, m][None, None, :]
        y = y + u * d_all[l][None, None, :]
        y = 0.5 * y * (1.0 + jax.scipy.special.erf(y / jnp.sqrt(2.0)))  # exact GELU
        y2 = y @ w_out_all[l] + b_out_all[l]
        z = y2[..., :H] * jax.nn.sigmoid(y2[..., H:])
        h = z + u
        mu = h.mean(-1, keepdims=True)
        var = ((h - mu) ** 2).mean(-1, keepdims=True)
        h = (h - mu) / jnp.sqrt(var + 1e-5) * gamma_all[l] + beta_all[l]
    pooled = h.mean(axis=1)
    return pooled @ w_dec + b_dec


# --------------------------------------------------------------------------------- main ----
if __name__ == "__main__":
    # Small shapes consistent with the module's forward: x is (B, L, d_input).
    B, L = 2, 16
    d_input, d_model, d_output = 4, 32, 20
    n_layers, d_state = 2, 8                      # d_state -> N (N//2 complex modes)

    key = jax.random.PRNGKey(0)
    k_x, k_enc, k_dec, k_layers = jax.random.split(key, 4)

    x = jax.random.normal(k_x, (B, L, d_input), jnp.float32)

    # encoder
    w_enc = jax.random.normal(k_enc, (d_input, d_model), jnp.float32) / math.sqrt(d_input)
    b_enc = jnp.zeros((d_model,), jnp.float32)

    # per-layer S4D parameters (deterministic synthetic init, matching the torch shapes)
    k_list, d_list, w_out_list, b_out_list, g_list, beta_list = [], [], [], [], [], []
    layer_keys = jax.random.split(k_layers, n_layers)
    n2 = d_state // 2
    for l in range(n_layers):
        kk = jax.random.split(layer_keys[l], 6)
        log_dt = (jax.random.uniform(kk[0], (d_model,)) *
                  (math.log(0.1) - math.log(0.001)) + math.log(0.001))
        c_re = jax.random.normal(kk[1], (d_model, n2), jnp.float32)
        c_im = jax.random.normal(kk[2], (d_model, n2), jnp.float32)
        log_a_real = jnp.log(0.5 * jnp.ones((d_model, n2), jnp.float32))
        a_imag = math.pi * jnp.tile(jnp.arange(n2, dtype=jnp.float32)[None, :], (d_model, 1))
        k_conv = compute_s4d_conv_kernel(log_dt, c_re, c_im, log_a_real, a_imag, L)  # (H, L)
        k_list.append(k_conv)

        d_list.append(jax.random.normal(kk[3], (d_model,), jnp.float32))
        # Conv1d(H, 2H, kernel_size=1): weight (2H, H, 1) stored transposed as (H, 2H)
        w_conv = jax.random.normal(kk[4], (2 * d_model, d_model), jnp.float32) / math.sqrt(d_model)
        w_out_list.append(w_conv.T)
        b_out_list.append(0.01 * jax.random.normal(kk[5], (2 * d_model,), jnp.float32))
        g_list.append(jnp.ones((d_model,), jnp.float32))
        beta_list.append(jnp.zeros((d_model,), jnp.float32))

    nat_params = (
        w_enc, b_enc,
        jnp.stack(k_list),         # (n_layers, H, L) S4D conv kernels
        jnp.stack(d_list),         # (n_layers, H)
        jnp.stack(w_out_list),     # (n_layers, H, 2H)
        jnp.stack(b_out_list),     # (n_layers, 2H)
        jnp.stack(g_list),         # (n_layers, H)
        jnp.stack(beta_list),      # (n_layers, H)
        jax.random.normal(k_dec, (d_model, d_output), jnp.float32) / math.sqrt(d_model),
        jnp.zeros((d_output,), jnp.float32),
    )

    bt = choose_batch_tile(B, d_model)
    kweights, meta = prepare_kernel_params(nat_params, L=L, bt=bt, d_output=d_output)

    run = functools.partial(s4_model_forward, x, nat_params, kweights, meta,
                            n_layers=n_layers, d_output=d_output, bt=bt)
    try:
        out = jax.block_until_ready(run(single_buffer_weights=True))
    except Exception:
        # portability guard: fall back to default (double-buffered) weight BlockSpecs
        out = jax.block_until_ready(run(single_buffer_weights=False))

    ref = s4_model_reference(x, nat_params, n_layers=n_layers)
    assert out.shape == (B, d_output), out.shape
    assert bool(jnp.all(jnp.isfinite(out)))
    np.testing.assert_allclose(np.asarray(out), np.asarray(ref), rtol=5e-2, atol=5e-2)

    print("KERNEL_OK")
</pallas_src>

<mosaic_0001>
module attributes {stable_mosaic.version = 11 : i64} {
  func.func @s4_forward_kernel(%arg0: i32, %arg1: memref<1x16x64xf32, #tpu.memory_space<vmem>>, %arg2: memref<48x16xbf16, #tpu.memory_space<vmem>>, %arg3: memref<16x48xbf16, #tpu.memory_space<vmem>>, %arg4: memref<2x24x64xf32, #tpu.memory_space<vmem>>, %arg5: memref<2x24x64xf32, #tpu.memory_space<vmem>>, %arg6: memref<2x1x64xf32, #tpu.memory_space<vmem>>, %arg7: memref<2x64x64xbf16, #tpu.memory_space<vmem>>, %arg8: memref<2x64x64xbf16, #tpu.memory_space<vmem>>, %arg9: memref<2x1x64xf32, #tpu.memory_space<vmem>>, %arg10: memref<2x1x64xf32, #tpu.memory_space<vmem>>, %arg11: memref<2x1x64xf32, #tpu.memory_space<vmem>>, %arg12: memref<2x1x64xf32, #tpu.memory_space<vmem>>, %arg13: memref<64x64xf32, #tpu.memory_space<vmem>>, %arg14: memref<64x256xbf16, #tpu.memory_space<vmem>>, %arg15: memref<1x256xf32, #tpu.memory_space<vmem>>, %arg16: memref<1x1x256xf32, #tpu.memory_space<vmem>>) attributes {dimension_semantics = [#tpu.dimension_semantics<parallel>], iteration_bounds = array<i64: 1>, scalar_prefetch = 0 : i64, scratch_operands = 0 : i64, tpu.core_type = #tpu.core_type<tc>, window_params = [{transform_indices = @transform_0, window_bounds = array<i64: 1, 16, 64>}, {pipeline_mode = #tpu.pipeline_mode<synchronous>, transform_indices = @transform_1, window_bounds = array<i64: 48, 16>}, {pipeline_mode = #tpu.pipeline_mode<synchronous>, transform_indices = @transform_2, window_bounds = array<i64: 16, 48>}, {pipeline_mode = #tpu.pipeline_mode<synchronous>, transform_indices = @transform_3, window_bounds = array<i64: 2, 24, 64>}, {pipeline_mode = #tpu.pipeline_mode<synchronous>, transform_indices = @transform_4, window_bounds = array<i64: 2, 24, 64>}, {pipeline_mode = #tpu.pipeline_mode<synchronous>, transform_indices = @transform_5, window_bounds = array<i64: 2, 1, 64>}, {pipeline_mode = #tpu.pipeline_mode<synchronous>, transform_indices = @transform_6, window_bounds = array<i64: 2, 64, 64>}, {pipeline_mode = #tpu.pipeline_mode<synchronous>, transform_indices = @transform_7, window_bounds = array<i64: 2, 64, 64>}, {pipeline_mode = #tpu.pipeline_mode<synchronous>, transform_indices = @transform_8, window_bounds = array<i64: 2, 1, 64>}, {pipeline_mode = #tpu.pipeline_mode<synchronous>, transform_indices = @transform_9, window_bounds = array<i64: 2, 1, 64>}, {pipeline_mode = #tpu.pipeline_mode<synchronous>, transform_indices = @transform_10, window_bounds = array<i64: 2, 1, 64>}, {pipeline_mode = #tpu.pipeline_mode<synchronous>, transform_indices = @transform_11, window_bounds = array<i64: 2, 1, 64>}, {pipeline_mode = #tpu.pipeline_mode<synchronous>, transform_indices = @transform_12, window_bounds = array<i64: 64, 64>}, {pipeline_mode = #tpu.pipeline_mode<synchronous>, transform_indices = @transform_13, window_bounds = array<i64: 64, 256>}, {pipeline_mode = #tpu.pipeline_mode<synchronous>, transform_indices = @transform_14, window_bounds = array<i64: 1, 256>}, {transform_indices = @transform_15, window_bounds = array<i64: 1, 1, 256>}]} {
    %c0 = arith.constant 0 : index
    %c0_0 = arith.constant 0 : index
    %c0_1 = arith.constant 0 : index
    %0 = vector.load %arg1[%c0, %c0_0, %c0_1] : memref<1x16x64xf32, #tpu.memory_space<vmem>>, vector<1x16x64xf32>
    %1 = vector.shape_cast %0 : vector<1x16x64xf32> to vector<16x64xf32>
    %c0_2 = arith.constant 0 : index
    %c0_3 = arith.constant 0 : index
    %2 = vector.load %arg2[%c0_2, %c0_3] : memref<48x16xbf16, #tpu.memory_space<vmem>>, vector<48x16xbf16>
    %c0_4 = arith.constant 0 : index
    %c0_5 = arith.constant 0 : index
    %3 = vector.load %arg3[%c0_4, %c0_5] : memref<16x48xbf16, #tpu.memory_space<vmem>>, vector<16x48xbf16>
    %c0_6 = arith.constant 0 : index
    %c0_7 = arith.constant 0 : index
    %4 = vector.load %arg13[%c0_6, %c0_7] : memref<64x64xf32, #tpu.memory_space<vmem>>, vector<64x64xf32>
    %c0_i32 = arith.constant 0 : i32
    %5 = arith.truncf %1 : vector<16x64xf32> to vector<16x64xbf16>
    %cst = arith.constant dense<0.000000e+00> : vector<48x64xf32>
    %6 = tpu.matmul %2, %5, %cst {dimension_numbers = #tpu.dot_dimension_numbers<[1], [0], [0], [1], [0, 0, 1, 1], [], []>} : vector<48x16xbf16>, vector<16x64xbf16>, vector<48x64xf32> -> vector<48x64xf32>
    %7 = vector.extract_strided_slice %6 {offsets = [0, 0], sizes = [24, 64], strides = [1, 1]} : vector<48x64xf32> to vector<24x64xf32>
    %8 = vector.extract_strided_slice %6 {offsets = [24, 0], sizes = [24, 64], strides = [1, 1]} : vector<48x64xf32> to vector<24x64xf32>
    %9 = arith.index_cast %c0_i32 : i32 to index
    %c0_8 = arith.constant 0 : index
    %c0_9 = arith.constant 0 : index
    %10 = vector.load %arg4[%9, %c0_8, %c0_9] : memref<2x24x64xf32, #tpu.memory_space<vmem>>, vector<1x24x64xf32>
    %11 = vector.shape_cast %10 : vector<1x24x64xf32> to vector<24x64xf32>
    %12 = arith.index_cast %c0_i32 : i32 to index
    %c0_10 = arith.constant 0 : index
    %c0_11 = arith.constant 0 : index
    %13 = vector.load %arg5[%12, %c0_10, %c0_11] : memref<2x24x64xf32, #tpu.memory_space<vmem>>, vector<1x24x64xf32>
    %14 = vector.shape_cast %13 : vector<1x24x64xf32> to vector<24x64xf32>
    %15 = arith.mulf %7, %11 : vector<24x64xf32>
    %16 = arith.mulf %8, %14 : vector<24x64xf32>
    %17 = arith.subf %15, %16 : vector<24x64xf32>
    %18 = arith.mulf %7, %14 : vector<24x64xf32>
    %19 = arith.mulf %8, %11 : vector<24x64xf32>
    %20 = arith.addf %18, %19 : vector<24x64xf32>
    %21 = tpu.concatenate %17, %20 in 0 : vector<24x64xf32>, vector<24x64xf32> -> vector<48x64xf32>
    %22 = arith.truncf %21 : vector<48x64xf32> to vector<48x64xbf16>
    %cst_12 = arith.constant dense<0.000000e+00> : vector<16x64xf32>
    %23 = tpu.matmul %3, %22, %cst_12 {dimension_numbers = #tpu.dot_dimension_numbers<[1], [0], [0], [1], [0, 0, 1, 1], [], []>} : vector<16x48xbf16>, vector<48x64xbf16>, vector<16x64xf32> -> vector<16x64xf32>
    %24 = arith.index_cast %c0_i32 : i32 to index
    %c0_13 = arith.constant 0 : index
    %c0_14 = arith.constant 0 : index
    %25 = vector.load %arg6[%24, %c0_13, %c0_14] : memref<2x1x64xf32, #tpu.memory_space<vmem>>, vector<1x1x64xf32>
    %26 = vector.shape_cast %25 : vector<1x1x64xf32> to vector<1x64xf32>
    %27 = vector.broadcast %26 : vector<1x64xf32> to vector<16x64xf32>
    %28 = arith.mulf %1, %27 : vector<16x64xf32>
    %29 = arith.addf %23, %28 : vector<16x64xf32>
    %cst_15 = arith.constant 5.000000e-01 : f32
    %30 = vector.broadcast %cst_15 : f32 to vector<16x64xf32>
    %31 = arith.mulf %30, %29 : vector<16x64xf32>
    %cst_16 = arith.constant 4.471500e-02 : f32
    %32 = vector.broadcast %cst_16 : f32 to vector<16x64xf32>
    %33 = arith.mulf %32, %29 : vector<16x64xf32>
    %34 = arith.mulf %33, %29 : vector<16x64xf32>
    %35 = arith.mulf %34, %29 : vector<16x64xf32>
    %36 = arith.addf %29, %35 : vector<16x64xf32>
    %cst_17 = arith.constant 0.797884583 : f32
    %37 = vector.broadcast %cst_17 : f32 to vector<16x64xf32>
    %38 = arith.mulf %37, %36 : vector<16x64xf32>
    %39 = math.tanh %38 : vector<16x64xf32>
    %cst_18 = arith.constant 1.000000e+00 : f32
    %40 = vector.broadcast %cst_18 : f32 to vector<16x64xf32>
    %41 = arith.addf %40, %39 : vector<16x64xf32>
    %42 = arith.mulf %31, %41 : vector<16x64xf32>
    %43 = arith.truncf %42 : vector<16x64xf32> to vector<16x64xbf16>
    %44 = arith.index_cast %c0_i32 : i32 to index
    %c0_19 = arith.constant 0 : index
    %c0_20 = arith.constant 0 : index
    %45 = vector.load %arg7[%44, %c0_19, %c0_20] : memref<2x64x64xbf16, #tpu.memory_space<vmem>>, vector<1x64x64xbf16>
    %46 = vector.shape_cast %45 : vector<1x64x64xbf16> to vector<64x64xbf16>
    %cst_21 = arith.constant dense<0.000000e+00> : vector<16x64xf32>
    %47 = tpu.matmul %43, %46, %cst_21 {dimension_numbers = #tpu.dot_dimension_numbers<[1], [0], [0], [1], [0, 0, 1, 1], [], []>} : vector<16x64xbf16>, vector<64x64xbf16>, vector<16x64xf32> -> vector<16x64xf32>
    %48 = arith.index_cast %c0_i32 : i32 to index
    %c0_22 = arith.constant 0 : index
    %c0_23 = arith.constant 0 : index
    %49 = vector.load %arg9[%48, %c0_22, %c0_23] : memref<2x1x64xf32, #tpu.memory_space<vmem>>, vector<1x1x64xf32>
    %50 = vector.shape_cast %49 : vector<1x1x64xf32> to vector<1x64xf32>
    %51 = vector.broadcast %50 : vector<1x64xf32> to vector<16x64xf32>
    %52 = arith.addf %47, %51 : vector<16x64xf32>
    %53 = arith.index_cast %c0_i32 : i32 to index
    %c0_24 = arith.constant 0 : index
    %c0_25 = arith.constant 0 : index
    %54 = vector.load %arg8[%53, %c0_24, %c0_25] : memref<2x64x64xbf16, #tpu.memory_space<vmem>>, vector<1x64x64xbf16>
    %55 = vector.shape_cast %54 : vector<1x64x64xbf16> to vector<64x64xbf16>
    %cst_26 = arith.constant dense<0.000000e+00> : vector<16x64xf32>
    %56 = tpu.matmul %43, %55, %cst_26 {dimension_numbers = #tpu.dot_dimension_numbers<[1], [0], [0], [1], [0, 0, 1, 1], [], []>} : vector<16x64xbf16>, vector<64x64xbf16>, vector<16x64xf32> -> vector<16x64xf32>
    %57 = arith.index_cast %c0_i32 : i32 to index
    %c0_27 = arith.constant 0 : index
    %c0_28 = arith.constant 0 : index
    %58 = vector.load %arg10[%57, %c0_27, %c0_28] : memref<2x1x64xf32, #tpu.memory_space<vmem>>, vector<1x1x64xf32>
    %59 = vector.shape_cast %58 : vector<1x1x64xf32> to vector<1x64xf32>
    %60 = vector.broadcast %59 : vector<1x64xf32> to vector<16x64xf32>
    %61 = arith.addf %56, %60 : vector<16x64xf32>
    %62 = arith.negf %61 : vector<16x64xf32>
    %63 = math.exp %62 : vector<16x64xf32>
    %cst_29 = arith.constant 1.000000e+00 : f32
    %64 = vector.broadcast %cst_29 : f32 to vector<16x64xf32>
    %65 = arith.addf %64, %63 : vector<16x64xf32>
    %66 = arith.divf %64, %65 : vector<16x64xf32>
    %67 = arith.mulf %52, %66 : vector<16x64xf32>
    %68 = arith.addf %67, %1 : vector<16x64xf32>
    %69 = arith.mulf %68, %68 : vector<16x64xf32>
    %70 = tpu.concatenate %68, %69 in 0 : vector<16x64xf32>, vector<16x64xf32> -> vector<32x64xf32>
    %cst_30 = arith.constant dense<0.000000e+00> : vector<32x64xf32>
    %71 = tpu.matmul %70, %4, %cst_30 {dimension_numbers = #tpu.dot_dimension_numbers<[1], [0], [0], [1], [0, 0, 1, 1], [], []>} : vector<32x64xf32>, vector<64x64xf32>, vector<32x64xf32> -> vector<32x64xf32>
    %72 = vector.extract_strided_slice %71 {offsets = [0, 0], sizes = [16, 64], strides = [1, 1]} : vector<32x64xf32> to vector<16x64xf32>
    %73 = vector.extract_strided_slice %71 {offsets = [16, 0], sizes = [16, 64], strides = [1, 1]} : vector<32x64xf32> to vector<16x64xf32>
    %74 = arith.mulf %72, %72 : vector<16x64xf32>
    %75 = arith.subf %73, %74 : vector<16x64xf32>
    %76 = arith.subf %68, %72 : vector<16x64xf32>
    %cst_31 = arith.constant 9.99999974E-6 : f32
    %77 = vector.broadcast %cst_31 : f32 to vector<16x64xf32>
    %78 = arith.addf %75, %77 : vector<16x64xf32>
    %79 = math.rsqrt %78 : vector<16x64xf32>
    %80 = arith.mulf %76, %79 : vector<16x64xf32>
    %81 = arith.index_cast %c0_i32 : i32 to index
    %c0_32 = arith.constant 0 : index
    %c0_33 = arith.constant 0 : index
    %82 = vector.load %arg11[%81, %c0_32, %c0_33] : memref<2x1x64xf32, #tpu.memory_space<vmem>>, vector<1x1x64xf32>
    %83 = vector.shape_cast %82 : vector<1x1x64xf32> to vector<1x64xf32>
    %84 = vector.broadcast %83 : vector<1x64xf32> to vector<16x64xf32>
    %85 = arith.mulf %80, %84 : vector<16x64xf32>
    %86 = arith.index_cast %c0_i32 : i32 to index
    %c0_34 = arith.constant 0 : index
    %c0_35 = arith.constant 0 : index
    %87 = vector.load %arg12[%86, %c0_34, %c0_35] : memref<2x1x64xf32, #tpu.memory_space<vmem>>, vector<1x1x64xf32>
    %88 = vector.shape_cast %87 : vector<1x1x64xf32> to vector<1x64xf32>
    %89 = vector.broadcast %88 : vector<1x64xf32> to vector<16x64xf32>
    %90 = arith.addf %85, %89 : vector<16x64xf32>
    %c1_i32 = arith.constant 1 : i32
    %91 = arith.truncf %90 : vector<16x64xf32> to vector<16x64xbf16>
    %cst_36 = arith.constant dense<0.000000e+00> : vector<48x64xf32>
    %92 = tpu.matmul %2, %91, %cst_36 {dimension_numbers = #tpu.dot_dimension_numbers<[1], [0], [0], [1], [0, 0, 1, 1], [], []>} : vector<48x16xbf16>, vector<16x64xbf16>, vector<48x64xf32> -> vector<48x64xf32>
    %93 = vector.extract_strided_slice %92 {offsets = [0, 0], sizes = [24, 64], strides = [1, 1]} : vector<48x64xf32> to vector<24x64xf32>
    %94 = vector.extract_strided_slice %92 {offsets = [24, 0], sizes = [24, 64], strides = [1, 1]} : vector<48x64xf32> to vector<24x64xf32>
    %95 = arith.index_cast %c1_i32 : i32 to index
    %c0_37 = arith.constant 0 : index
    %c0_38 = arith.constant 0 : index
    %96 = vector.load %arg4[%95, %c0_37, %c0_38] : memref<2x24x64xf32, #tpu.memory_space<vmem>>, vector<1x24x64xf32>
    %97 = vector.shape_cast %96 : vector<1x24x64xf32> to vector<24x64xf32>
    %98 = arith.index_cast %c1_i32 : i32 to index
    %c0_39 = arith.constant 0 : index
    %c0_40 = arith.constant 0 : index
    %99 = vector.load %arg5[%98, %c0_39, %c0_40] : memref<2x24x64xf32, #tpu.memory_space<vmem>>, vector<1x24x64xf32>
    %100 = vector.shape_cast %99 : vector<1x24x64xf32> to vector<24x64xf32>
    %101 = arith.mulf %93, %97 : vector<24x64xf32>
    %102 = arith.mulf %94, %100 : vector<24x64xf32>
    %103 = arith.subf %101, %102 : vector<24x64xf32>
    %104 = arith.mulf %93, %100 : vector<24x64xf32>
    %105 = arith.mulf %94, %97 : vector<24x64xf32>
    %106 = arith.addf %104, %105 : vector<24x64xf32>
    %107 = tpu.concatenate %103, %106 in 0 : vector<24x64xf32>, vector<24x64xf32> -> vector<48x64xf32>
    %108 = arith.truncf %107 : vector<48x64xf32> to vector<48x64xbf16>
    %cst_41 = arith.constant dense<0.000000e+00> : vector<16x64xf32>
    %109 = tpu.matmul %3, %108, %cst_41 {dimension_numbers = #tpu.dot_dimension_numbers<[1], [0], [0], [1], [0, 0, 1, 1], [], []>} : vector<16x48xbf16>, vector<48x64xbf16>, vector<16x64xf32> -> vector<16x64xf32>
    %110 = arith.index_cast %c1_i32 : i32 to index
    %c0_42 = arith.constant 0 : index
    %c0_43 = arith.constant 0 : index
    %111 = vector.load %arg6[%110, %c0_42, %c0_43] : memref<2x1x64xf32, #tpu.memory_space<vmem>>, vector<1x1x64xf32>
    %112 = vector.shape_cast %111 : vector<1x1x64xf32> to vector<1x64xf32>
    %113 = vector.broadcast %112 : vector<1x64xf32> to vector<16x64xf32>
    %114 = arith.mulf %90, %113 : vector<16x64xf32>
    %115 = arith.addf %109, %114 : vector<16x64xf32>
    %cst_44 = arith.constant 5.000000e-01 : f32
    %116 = vector.broadcast %cst_44 : f32 to vector<16x64xf32>
    %117 = arith.mulf %116, %115 : vector<16x64xf32>
    %cst_45 = arith.constant 4.471500e-02 : f32
    %118 = vector.broadcast %cst_45 : f32 to vector<16x64xf32>
    %119 = arith.mulf %118, %115 : vector<16x64xf32>
    %120 = arith.mulf %119, %115 : vector<16x64xf32>
    %121 = arith.mulf %120, %115 : vector<16x64xf32>
    %122 = arith.addf %115, %121 : vector<16x64xf32>
    %cst_46 = arith.constant 0.797884583 : f32
    %123 = vector.broadcast %cst_46 : f32 to vector<16x64xf32>
    %124 = arith.mulf %123, %122 : vector<16x64xf32>
    %125 = math.tanh %124 : vector<16x64xf32>
    %cst_47 = arith.constant 1.000000e+00 : f32
    %126 = vector.broadcast %cst_47 : f32 to vector<16x64xf32>
    %127 = arith.addf %126, %125 : vector<16x64xf32>
    %128 = arith.mulf %117, %127 : vector<16x64xf32>
    %129 = arith.truncf %128 : vector<16x64xf32> to vector<16x64xbf16>
    %130 = arith.index_cast %c1_i32 : i32 to index
    %c0_48 = arith.constant 0 : index
    %c0_49 = arith.constant 0 : index
    %131 = vector.load %arg7[%130, %c0_48, %c0_49] : memref<2x64x64xbf16, #tpu.memory_space<vmem>>, vector<1x64x64xbf16>
    %132 = vector.shape_cast %131 : vector<1x64x64xbf16> to vector<64x64xbf16>
    %cst_50 = arith.constant dense<0.000000e+00> : vector<16x64xf32>
    %133 = tpu.matmul %129, %132, %cst_50 {dimension_numbers = #tpu.dot_dimension_numbers<[1], [0], [0], [1], [0, 0, 1, 1], [], []>} : vector<16x64xbf16>, vector<64x64xbf16>, vector<16x64xf32> -> vector<16x64xf32>
    %134 = arith.index_cast %c1_i32 : i32 to index
    %c0_51 = arith.constant 0 : index
    %c0_52 = arith.constant 0 : index
    %135 = vector.load %arg9[%134, %c0_51, %c0_52] : memref<2x1x64xf32, #tpu.memory_space<vmem>>, vector<1x1x64xf32>
    %136 = vector.shape_cast %135 : vector<1x1x64xf32> to vector<1x64xf32>
    %137 = vector.broadcast %136 : vector<1x64xf32> to vector<16x64xf32>
    %138 = arith.addf %133, %137 : vector<16x64xf32>
    %139 = arith.index_cast %c1_i32 : i32 to index
    %c0_53 = arith.constant 0 : index
    %c0_54 = arith.constant 0 : index
    %140 = vector.load %arg8[%139, %c0_53, %c0_54] : memref<2x64x64xbf16, #tpu.memory_space<vmem>>, vector<1x64x64xbf16>
    %141 = vector.shape_cast %140 : vector<1x64x64xbf16> to vector<64x64xbf16>
    %cst_55 = arith.constant dense<0.000000e+00> : vector<16x64xf32>
    %142 = tpu.matmul %129, %141, %cst_55 {dimension_numbers = #tpu.dot_dimension_numbers<[1], [0], [0], [1], [0, 0, 1, 1], [], []>} : vector<16x64xbf16>, vector<64x64xbf16>, vector<16x64xf32> -> vector<16x64xf32>
    %143 = arith.index_cast %c1_i32 : i32 to index
    %c0_56 = arith.constant 0 : index
    %c0_57 = arith.constant 0 : index
    %144 = vector.load %arg10[%143, %c0_56, %c0_57] : memref<2x1x64xf32, #tpu.memory_space<vmem>>, vector<1x1x64xf32>
    %145 = vector.shape_cast %144 : vector<1x1x64xf32> to vector<1x64xf32>
    %146 = vector.broadcast %145 : vector<1x64xf32> to vector<16x64xf32>
    %147 = arith.addf %142, %146 : vector<16x64xf32>
    %148 = arith.negf %147 : vector<16x64xf32>
    %149 = math.exp %148 : vector<16x64xf32>
    %cst_58 = arith.constant 1.000000e+00 : f32
    %150 = vector.broadcast %cst_58 : f32 to vector<16x64xf32>
    %151 = arith.addf %150, %149 : vector<16x64xf32>
    %152 = arith.divf %150, %151 : vector<16x64xf32>
    %153 = arith.mulf %138, %152 : vector<16x64xf32>
    %154 = arith.addf %153, %90 : vector<16x64xf32>
    %155 = arith.mulf %154, %154 : vector<16x64xf32>
    %156 = tpu.concatenate %154, %155 in 0 : vector<16x64xf32>, vector<16x64xf32> -> vector<32x64xf32>
    %cst_59 = arith.constant dense<0.000000e+00> : vector<32x64xf32>
    %157 = tpu.matmul %156, %4, %cst_59 {dimension_numbers = #tpu.dot_dimension_numbers<[1], [0], [0], [1], [0, 0, 1, 1], [], []>} : vector<32x64xf32>, vector<64x64xf32>, vector<32x64xf32> -> vector<32x64xf32>
    %158 = vector.extract_strided_slice %157 {offsets = [0, 0], sizes = [16, 64], strides = [1, 1]} : vector<32x64xf32> to vector<16x64xf32>
    %159 = vector.extract_strided_slice %157 {offsets = [16, 0], sizes = [16, 64], strides = [1, 1]} : vector<32x64xf32> to vector<16x64xf32>
    %160 = arith.mulf %158, %158 : vector<16x64xf32>
    %161 = arith.subf %159, %160 : vector<16x64xf32>
    %162 = arith.subf %154, %158 : vector<16x64xf32>
    %cst_60 = arith.constant 9.99999974E-6 : f32
    %163 = vector.broadcast %cst_60 : f32 to vector<16x64xf32>
    %164 = arith.addf %161, %163 : vector<16x64xf32>
    %165 = math.rsqrt %164 : vector<16x64xf32>
    %166 = arith.mulf %162, %165 : vector<16x64xf32>
    %167 = arith.index_cast %c1_i32 : i32 to index
    %c0_61 = arith.constant 0 : index
    %c0_62 = arith.constant 0 : index
    %168 = vector.load %arg11[%167, %c0_61, %c0_62] : memref<2x1x64xf32, #tpu.memory_space<vmem>>, vector<1x1x64xf32>
    %169 = vector.shape_cast %168 : vector<1x1x64xf32> to vector<1x64xf32>
    %170 = vector.broadcast %169 : vector<1x64xf32> to vector<16x64xf32>
    %171 = arith.mulf %166, %170 : vector<16x64xf32>
    %172 = arith.index_cast %c1_i32 : i32 to index
    %c0_63 = arith.constant 0 : index
    %c0_64 = arith.constant 0 : index
    %173 = vector.load %arg12[%172, %c0_63, %c0_64] : memref<2x1x64xf32, #tpu.memory_space<vmem>>, vector<1x1x64xf32>
    %174 = vector.shape_cast %173 : vector<1x1x64xf32> to vector<1x64xf32>
    %175 = vector.broadcast %174 : vector<1x64xf32> to vector<16x64xf32>
    %176 = arith.addf %171, %175 : vector<16x64xf32>
    %c2_i32 = arith.constant 2 : i32
    %cst_65 = arith.constant dense<0.000000e+00> : vector<64xf32>
    %177 = vector.multi_reduction <add>, %176, %cst_65 [0] : vector<16x64xf32> to vector<64xf32>
    %178 = vector.shape_cast %177 : vector<64xf32> to vector<1x64xf32>
    %cst_66 = arith.constant 1.600000e+01 : f32
    %179 = vector.broadcast %cst_66 : f32 to vector<1x64xf32>
    %180 = arith.divf %178, %179 : vector<1x64xf32>
    %181 = arith.truncf %180 : vector<1x64xf32> to vector<1x64xbf16>
    %c0_67 = arith.constant 0 : index
    %c0_68 = arith.constant 0 : index
    %182 = vector.load %arg14[%c0_67, %c0_68] : memref<64x256xbf16, #tpu.memory_space<vmem>>, vector<64x256xbf16>
    %cst_69 = arith.constant dense<0.000000e+00> : vector<1x256xf32>
    %183 = tpu.matmul %181, %182, %cst_69 {dimension_numbers = #tpu.dot_dimension_numbers<[1], [0], [0], [1], [0, 0, 1, 1], [], []>} : vector<1x64xbf16>, vector<64x256xbf16>, vector<1x256xf32> -> vector<1x256xf32>
    %c0_70 = arith.constant 0 : index
    %c0_71 = arith.constant 0 : index
    %184 = vector.load %arg15[%c0_70, %c0_71] : memref<1x256xf32, #tpu.memory_space<vmem>>, vector<1x256xf32>
    %185 = arith.addf %183, %184 : vector<1x256xf32>
    %c0_72 = arith.constant 0 : index
    %c0_73 = arith.constant 0 : index
    %c0_74 = arith.constant 0 : index
    %186 = vector.load %arg16[%c0_72, %c0_73, %c0_74] : memref<1x1x256xf32, #tpu.memory_space<vmem>>, vector<1x1x256xf32>
    %187 = vector.shape_cast %186 : vector<1x1x256xf32> to vector<1x256xf32>
    %188 = vector.shape_cast %185 : vector<1x256xf32> to vector<1x1x256xf32>
    tpu.vector_store %arg16[%c0_72, %c0_73, %c0_74], %188 {strides = array<i32>} : memref<1x1x256xf32, #tpu.memory_space<vmem>>, vector<1x1x256xf32>,
    return
  }
  func.func @transform_0(%arg0: i32) -> (i32, i32, i32) {
    %c0_i32 = arith.constant 0 : i32
    %c0_i32_0 = arith.constant 0 : i32
    %c0_i32_1 = arith.constant 0 : i32
    return %arg0, %c0_i32, %c0_i32_0 : i32, i32, i32
  }
  func.func @transform_1(%arg0: i32) -> (i32, i32) {
    %c0_i32 = arith.constant 0 : i32
    %c0_i32_0 = arith.constant 0 : i32
    %c0_i32_1 = arith.constant 0 : i32
    return %c0_i32, %c0_i32_0 : i32, i32
  }
  func.func @transform_2(%arg0: i32) -> (i32, i32) {
    %c0_i32 = arith.constant 0 : i32
    %c0_i32_0 = arith.constant 0 : i32
    %c0_i32_1 = arith.constant 0 : i32
    return %c0_i32, %c0_i32_0 : i32, i32
  }
  func.func @transform_3(%arg0: i32) -> (i32, i32, i32) {
    %c0_i32 = arith.constant 0 : i32
    %c0_i32_0 = arith.constant 0 : i32
    %c0_i32_1 = arith.constant 0 : i32
    %c0_i32_2 = arith.constant 0 : i32
    return %c0_i32, %c0_i32_0, %c0_i32_1 : i32, i32, i32
  }
  func.func @transform_4(%arg0: i32) -> (i32, i32, i32) {
    %c0_i32 = arith.constant 0 : i32
    %c0_i32_0 = arith.constant 0 : i32
    %c0_i32_1 = arith.constant 0 : i32
    %c0_i32_2 = arith.constant 0 : i32
    return %c0_i32, %c0_i32_0, %c0_i32_1 : i32, i32, i32
  }
  func.func @transform_5(%arg0: i32) -> (i32, i32, i32) {
    %c0_i32 = arith.constant 0 : i32
    %c0_i32_0 = arith.constant 0 : i32
    %c0_i32_1 = arith.constant 0 : i32
    %c0_i32_2 = arith.constant 0 : i32
    return %c0_i32, %c0_i32_0, %c0_i32_1 : i32, i32, i32
  }
  func.func @transform_6(%arg0: i32) -> (i32, i32, i32) {
    %c0_i32 = arith.constant 0 : i32
    %c0_i32_0 = arith.constant 0 : i32
    %c0_i32_1 = arith.constant 0 : i32
    %c0_i32_2 = arith.constant 0 : i32
    return %c0_i32, %c0_i32_0, %c0_i32_1 : i32, i32, i32
  }
  func.func @transform_7(%arg0: i32) -> (i32, i32, i32) {
    %c0_i32 = arith.constant 0 : i32
    %c0_i32_0 = arith.constant 0 : i32
    %c0_i32_1 = arith.constant 0 : i32
    %c0_i32_2 = arith.constant 0 : i32
    return %c0_i32, %c0_i32_0, %c0_i32_1 : i32, i32, i32
  }
  func.func @transform_8(%arg0: i32) -> (i32, i32, i32) {
    %c0_i32 = arith.constant 0 : i32
    %c0_i32_0 = arith.constant 0 : i32
    %c0_i32_1 = arith.constant 0 : i32
    %c0_i32_2 = arith.constant 0 : i32
    return %c0_i32, %c0_i32_0, %c0_i32_1 : i32, i32, i32
  }
  func.func @transform_9(%arg0: i32) -> (i32, i32, i32) {
    %c0_i32 = arith.constant 0 : i32
    %c0_i32_0 = arith.constant 0 : i32
    %c0_i32_1 = arith.constant 0 : i32
    %c0_i32_2 = arith.constant 0 : i32
    return %c0_i32, %c0_i32_0, %c0_i32_1 : i32, i32, i32
  }
  func.func @transform_10(%arg0: i32) -> (i32, i32, i32) {
    %c0_i32 = arith.constant 0 : i32
    %c0_i32_0 = arith.constant 0 : i32
    %c0_i32_1 = arith.constant 0 : i32
    %c0_i32_2 = arith.constant 0 : i32
    return %c0_i32, %c0_i32_0, %c0_i32_1 : i32, i32, i32
  }
  func.func @transform_11(%arg0: i32) -> (i32, i32, i32) {
    %c0_i32 = arith.constant 0 : i32
    %c0_i32_0 = arith.constant 0 : i32
    %c0_i32_1 = arith.constant 0 : i32
    %c0_i32_2 = arith.constant 0 : i32
    return %c0_i32, %c0_i32_0, %c0_i32_1 : i32, i32, i32
  }
  func.func @transform_12(%arg0: i32) -> (i32, i32) {
    %c0_i32 = arith.constant 0 : i32
    %c0_i32_0 = arith.constant 0 : i32
    %c0_i32_1 = arith.constant 0 : i32
    return %c0_i32, %c0_i32_0 : i32, i32
  }
  func.func @transform_13(%arg0: i32) -> (i32, i32) {
    %c0_i32 = arith.constant 0 : i32
    %c0_i32_0 = arith.constant 0 : i32
    %c0_i32_1 = arith.constant 0 : i32
    return %c0_i32, %c0_i32_0 : i32, i32
  }
  func.func @transform_14(%arg0: i32) -> (i32, i32) {
    %c0_i32 = arith.constant 0 : i32
    %c0_i32_0 = arith.constant 0 : i32
    %c0_i32_1 = arith.constant 0 : i32
    return %c0_i32, %c0_i32_0 : i32, i32
  }
  func.func @transform_15(%arg0: i32) -> (i32, i32, i32) {
    %c0_i32 = arith.constant 0 : i32
    %c0_i32_0 = arith.constant 0 : i32
    %c0_i32_1 = arith.constant 0 : i32
    return %arg0, %c0_i32, %c0_i32_0 : i32, i32, i32
  }
}

module attributes {stable_mosaic.version = 11 : i64} {
  func.func @s4_forward_kernel(%arg0: i32, %arg1: memref<1x16x64xf32, #tpu.memory_space<vmem>>, %arg2: memref<48x16xbf16, #tpu.memory_space<vmem>>, %arg3: memref<16x48xbf16, #tpu.memory_space<vmem>>, %arg4: memref<2x24x64xf32, #tpu.memory_space<vmem>>, %arg5: memref<2x24x64xf32, #tpu.memory_space<vmem>>, %arg6: memref<2x1x64xf32, #tpu.memory_space<vmem>>, %arg7: memref<2x64x64xbf16, #tpu.memory_space<vmem>>, %arg8: memref<2x64x64xbf16, #tpu.memory_space<vmem>>, %arg9: memref<2x1x64xf32, #tpu.memory_space<vmem>>, %arg10: memref<2x1x64xf32, #tpu.memory_space<vmem>>, %arg11: memref<2x1x64xf32, #tpu.memory_space<vmem>>, %arg12: memref<2x1x64xf32, #tpu.memory_space<vmem>>, %arg13: memref<64x64xf32, #tpu.memory_space<vmem>>, %arg14: memref<64x256xbf16, #tpu.memory_space<vmem>>, %arg15: memref<1x256xf32, #tpu.memory_space<vmem>>, %arg16: memref<1x1x256xf32, #tpu.memory_space<vmem>>) attributes {dimension_semantics = [#tpu.dimension_semantics<parallel>], iteration_bounds = array<i64: 1>, scalar_prefetch = 0 : i64, scratch_operands = 0 : i64, tpu.core_type = #tpu.core_type<tc>, window_params = [{transform_indices = @transform_0, window_bounds = array<i64: 1, 16, 64>}, {pipeline_mode = #tpu.pipeline_mode<synchronous>, transform_indices = @transform_1, window_bounds = array<i64: 48, 16>}, {pipeline_mode = #tpu.pipeline_mode<synchronous>, transform_indices = @transform_2, window_bounds = array<i64: 16, 48>}, {pipeline_mode = #tpu.pipeline_mode<synchronous>, transform_indices = @transform_3, window_bounds = array<i64: 2, 24, 64>}, {pipeline_mode = #tpu.pipeline_mode<synchronous>, transform_indices = @transform_4, window_bounds = array<i64: 2, 24, 64>}, {pipeline_mode = #tpu.pipeline_mode<synchronous>, transform_indices = @transform_5, window_bounds = array<i64: 2, 1, 64>}, {pipeline_mode = #tpu.pipeline_mode<synchronous>, transform_indices = @transform_6, window_bounds = array<i64: 2, 64, 64>}, {pipeline_mode = #tpu.pipeline_mode<synchronous>, transform_indices = @transform_7, window_bounds = array<i64: 2, 64, 64>}, {pipeline_mode = #tpu.pipeline_mode<synchronous>, transform_indices = @transform_8, window_bounds = array<i64: 2, 1, 64>}, {pipeline_mode = #tpu.pipeline_mode<synchronous>, transform_indices = @transform_9, window_bounds = array<i64: 2, 1, 64>}, {pipeline_mode = #tpu.pipeline_mode<synchronous>, transform_indices = @transform_10, window_bounds = array<i64: 2, 1, 64>}, {pipeline_mode = #tpu.pipeline_mode<synchronous>, transform_indices = @transform_11, window_bounds = array<i64: 2, 1, 64>}, {pipeline_mode = #tpu.pipeline_mode<synchronous>, transform_indices = @transform_12, window_bounds = array<i64: 64, 64>}, {pipeline_mode = #tpu.pipeline_mode<synchronous>, transform_indices = @transform_13, window_bounds = array<i64: 64, 256>}, {pipeline_mode = #tpu.pipeline_mode<synchronous>, transform_indices = @transform_14, window_bounds = array<i64: 1, 256>}, {transform_indices = @transform_15, window_bounds = array<i64: 1, 1, 256>}]} {
    %c0 = arith.constant 0 : index
    %c0_0 = arith.constant 0 : index
    %c0_1 = arith.constant 0 : index
    %0 = vector.load %arg1[%c0, %c0_0, %c0_1] : memref<1x16x64xf32, #tpu.memory_space<vmem>>, vector<1x16x64xf32>
    %1 = vector.shape_cast %0 : vector<1x16x64xf32> to vector<16x64xf32>
    %c0_2 = arith.constant 0 : index
    %c0_3 = arith.constant 0 : index
    %2 = vector.load %arg2[%c0_2, %c0_3] : memref<48x16xbf16, #tpu.memory_space<vmem>>, vector<48x16xbf16>
    %c0_4 = arith.constant 0 : index
    %c0_5 = arith.constant 0 : index
    %3 = vector.load %arg3[%c0_4, %c0_5] : memref<16x48xbf16, #tpu.memory_space<vmem>>, vector<16x48xbf16>
    %c0_6 = arith.constant 0 : index
    %c0_7 = arith.constant 0 : index
    %4 = vector.load %arg13[%c0_6, %c0_7] : memref<64x64xf32, #tpu.memory_space<vmem>>, vector<64x64xf32>
    %c0_i32 = arith.constant 0 : i32
    %5 = arith.truncf %1 : vector<16x64xf32> to vector<16x64xbf16>
    %cst = arith.constant dense<0.000000e+00> : vector<48x64xf32>
    %6 = tpu.matmul %2, %5, %cst {dimension_numbers = #tpu.dot_dimension_numbers<[1], [0], [0], [1], [0, 0, 1, 1], [], []>} : vector<48x16xbf16>, vector<16x64xbf16>, vector<48x64xf32> -> vector<48x64xf32>
    %7 = vector.extract_strided_slice %6 {offsets = [0, 0], sizes = [24, 64], strides = [1, 1]} : vector<48x64xf32> to vector<24x64xf32>
    %8 = vector.extract_strided_slice %6 {offsets = [24, 0], sizes = [24, 64], strides = [1, 1]} : vector<48x64xf32> to vector<24x64xf32>
    %9 = arith.index_cast %c0_i32 : i32 to index
    %c0_8 = arith.constant 0 : index
    %c0_9 = arith.constant 0 : index
    %10 = vector.load %arg4[%9, %c0_8, %c0_9] : memref<2x24x64xf32, #tpu.memory_space<vmem>>, vector<1x24x64xf32>
    %11 = vector.shape_cast %10 : vector<1x24x64xf32> to vector<24x64xf32>
    %12 = arith.index_cast %c0_i32 : i32 to index
    %c0_10 = arith.constant 0 : index
    %c0_11 = arith.constant 0 : index
    %13 = vector.load %arg5[%12, %c0_10, %c0_11] : memref<2x24x64xf32, #tpu.memory_space<vmem>>, vector<1x24x64xf32>
    %14 = vector.shape_cast %13 : vector<1x24x64xf32> to vector<24x64xf32>
    %15 = arith.mulf %7, %11 : vector<24x64xf32>
    %16 = arith.mulf %8, %14 : vector<24x64xf32>
    %17 = arith.subf %15, %16 : vector<24x64xf32>
    %18 = arith.mulf %7, %14 : vector<24x64xf32>
    %19 = arith.mulf %8, %11 : vector<24x64xf32>
    %20 = arith.addf %18, %19 : vector<24x64xf32>
    %21 = tpu.concatenate %17, %20 in 0 : vector<24x64xf32>, vector<24x64xf32> -> vector<48x64xf32>
    %22 = arith.truncf %21 : vector<48x64xf32> to vector<48x64xbf16>
    %cst_12 = arith.constant dense<0.000000e+00> : vector<16x64xf32>
    %23 = tpu.matmul %3, %22, %cst_12 {dimension_numbers = #tpu.dot_dimension_numbers<[1], [0], [0], [1], [0, 0, 1, 1], [], []>} : vector<16x48xbf16>, vector<48x64xbf16>, vector<16x64xf32> -> vector<16x64xf32>
    %24 = arith.index_cast %c0_i32 : i32 to index
    %c0_13 = arith.constant 0 : index
    %c0_14 = arith.constant 0 : index
    %25 = vector.load %arg6[%24, %c0_13, %c0_14] : memref<2x1x64xf32, #tpu.memory_space<vmem>>, vector<1x1x64xf32>
    %26 = vector.shape_cast %25 : vector<1x1x64xf32> to vector<1x64xf32>
    %27 = vector.broadcast %26 : vector<1x64xf32> to vector<16x64xf32>
    %28 = arith.mulf %1, %27 : vector<16x64xf32>
    %29 = arith.addf %23, %28 : vector<16x64xf32>
    %cst_15 = arith.constant 5.000000e-01 : f32
    %30 = vector.broadcast %cst_15 : f32 to vector<16x64xf32>
    %31 = arith.mulf %30, %29 : vector<16x64xf32>
    %cst_16 = arith.constant 4.471500e-02 : f32
    %32 = vector.broadcast %cst_16 : f32 to vector<16x64xf32>
    %33 = arith.mulf %32, %29 : vector<16x64xf32>
    %34 = arith.mulf %33, %29 : vector<16x64xf32>
    %35 = arith.mulf %34, %29 : vector<16x64xf32>
    %36 = arith.addf %29, %35 : vector<16x64xf32>
    %cst_17 = arith.constant 0.797884583 : f32
    %37 = vector.broadcast %cst_17 : f32 to vector<16x64xf32>
    %38 = arith.mulf %37, %36 : vector<16x64xf32>
    %39 = math.tanh %38 : vector<16x64xf32>
    %cst_18 = arith.constant 1.000000e+00 : f32
    %40 = vector.broadcast %cst_18 : f32 to vector<16x64xf32>
    %41 = arith.addf %40, %39 : vector<16x64xf32>
    %42 = arith.mulf %31, %41 : vector<16x64xf32>
    %43 = arith.truncf %42 : vector<16x64xf32> to vector<16x64xbf16>
    %44 = arith.index_cast %c0_i32 : i32 to index
    %c0_19 = arith.constant 0 : index
    %c0_20 = arith.constant 0 : index
    %45 = vector.load %arg7[%44, %c0_19, %c0_20] : memref<2x64x64xbf16, #tpu.memory_space<vmem>>, vector<1x64x64xbf16>
    %46 = vector.shape_cast %45 : vector<1x64x64xbf16> to vector<64x64xbf16>
    %cst_21 = arith.constant dense<0.000000e+00> : vector<16x64xf32>
    %47 = tpu.matmul %43, %46, %cst_21 {dimension_numbers = #tpu.dot_dimension_numbers<[1], [0], [0], [1], [0, 0, 1, 1], [], []>} : vector<16x64xbf16>, vector<64x64xbf16>, vector<16x64xf32> -> vector<16x64xf32>
    %48 = arith.index_cast %c0_i32 : i32 to index
    %c0_22 = arith.constant 0 : index
    %c0_23 = arith.constant 0 : index
    %49 = vector.load %arg9[%48, %c0_22, %c0_23] : memref<2x1x64xf32, #tpu.memory_space<vmem>>, vector<1x1x64xf32>
    %50 = vector.shape_cast %49 : vector<1x1x64xf32> to vector<1x64xf32>
    %51 = vector.broadcast %50 : vector<1x64xf32> to vector<16x64xf32>
    %52 = arith.addf %47, %51 : vector<16x64xf32>
    %53 = arith.index_cast %c0_i32 : i32 to index
    %c0_24 = arith.constant 0 : index
    %c0_25 = arith.constant 0 : index
    %54 = vector.load %arg8[%53, %c0_24, %c0_25] : memref<2x64x64xbf16, #tpu.memory_space<vmem>>, vector<1x64x64xbf16>
    %55 = vector.shape_cast %54 : vector<1x64x64xbf16> to vector<64x64xbf16>
    %cst_26 = arith.constant dense<0.000000e+00> : vector<16x64xf32>
    %56 = tpu.matmul %43, %55, %cst_26 {dimension_numbers = #tpu.dot_dimension_numbers<[1], [0], [0], [1], [0, 0, 1, 1], [], []>} : vector<16x64xbf16>, vector<64x64xbf16>, vector<16x64xf32> -> vector<16x64xf32>
    %57 = arith.index_cast %c0_i32 : i32 to index
    %c0_27 = arith.constant 0 : index
    %c0_28 = arith.constant 0 : index
    %58 = vector.load %arg10[%57, %c0_27, %c0_28] : memref<2x1x64xf32, #tpu.memory_space<vmem>>, vector<1x1x64xf32>
    %59 = vector.shape_cast %58 : vector<1x1x64xf32> to vector<1x64xf32>
    %60 = vector.broadcast %59 : vector<1x64xf32> to vector<16x64xf32>
    %61 = arith.addf %56, %60 : vector<16x64xf32>
    %62 = arith.negf %61 : vector<16x64xf32>
    %63 = math.exp %62 : vector<16x64xf32>
    %cst_29 = arith.constant 1.000000e+00 : f32
    %64 = vector.broadcast %cst_29 : f32 to vector<16x64xf32>
    %65 = arith.addf %64, %63 : vector<16x64xf32>
    %66 = arith.divf %64, %65 : vector<16x64xf32>
    %67 = arith.mulf %52, %66 : vector<16x64xf32>
    %68 = arith.addf %67, %1 : vector<16x64xf32>
    %69 = arith.mulf %68, %68 : vector<16x64xf32>
    %70 = tpu.concatenate %68, %69 in 0 : vector<16x64xf32>, vector<16x64xf32> -> vector<32x64xf32>
    %cst_30 = arith.constant dense<0.000000e+00> : vector<32x64xf32>
    %71 = tpu.matmul %70, %4, %cst_30 {dimension_numbers = #tpu.dot_dimension_numbers<[1], [0], [0], [1], [0, 0, 1, 1], [], []>} : vector<32x64xf32>, vector<64x64xf32>, vector<32x64xf32> -> vector<32x64xf32>
    %72 = vector.extract_strided_slice %71 {offsets = [0, 0], sizes = [16, 64], strides = [1, 1]} : vector<32x64xf32> to vector<16x64xf32>
    %73 = vector.extract_strided_slice %71 {offsets = [16, 0], sizes = [16, 64], strides = [1, 1]} : vector<32x64xf32> to vector<16x64xf32>
    %74 = arith.mulf %72, %72 : vector<16x64xf32>
    %75 = arith.subf %73, %74 : vector<16x64xf32>
    %76 = arith.subf %68, %72 : vector<16x64xf32>
    %cst_31 = arith.constant 9.99999974E-6 : f32
    %77 = vector.broadcast %cst_31 : f32 to vector<16x64xf32>
    %78 = arith.addf %75, %77 : vector<16x64xf32>
    %79 = math.rsqrt %78 : vector<16x64xf32>
    %80 = arith.mulf %76, %79 : vector<16x64xf32>
    %81 = arith.index_cast %c0_i32 : i32 to index
    %c0_32 = arith.constant 0 : index
    %c0_33 = arith.constant 0 : index
    %82 = vector.load %arg11[%81, %c0_32, %c0_33] : memref<2x1x64xf32, #tpu.memory_space<vmem>>, vector<1x1x64xf32>
    %83 = vector.shape_cast %82 : vector<1x1x64xf32> to vector<1x64xf32>
    %84 = vector.broadcast %83 : vector<1x64xf32> to vector<16x64xf32>
    %85 = arith.mulf %80, %84 : vector<16x64xf32>
    %86 = arith.index_cast %c0_i32 : i32 to index
    %c0_34 = arith.constant 0 : index
    %c0_35 = arith.constant 0 : index
    %87 = vector.load %arg12[%86, %c0_34, %c0_35] : memref<2x1x64xf32, #tpu.memory_space<vmem>>, vector<1x1x64xf32>
    %88 = vector.shape_cast %87 : vector<1x1x64xf32> to vector<1x64xf32>
    %89 = vector.broadcast %88 : vector<1x64xf32> to vector<16x64xf32>
    %90 = arith.addf %85, %89 : vector<16x64xf32>
    %c1_i32 = arith.constant 1 : i32
    %91 = arith.truncf %90 : vector<16x64xf32> to vector<16x64xbf16>
    %cst_36 = arith.constant dense<0.000000e+00> : vector<48x64xf32>
    %92 = tpu.matmul %2, %91, %cst_36 {dimension_numbers = #tpu.dot_dimension_numbers<[1], [0], [0], [1], [0, 0, 1, 1], [], []>} : vector<48x16xbf16>, vector<16x64xbf16>, vector<48x64xf32> -> vector<48x64xf32>
    %93 = vector.extract_strided_slice %92 {offsets = [0, 0], sizes = [24, 64], strides = [1, 1]} : vector<48x64xf32> to vector<24x64xf32>
    %94 = vector.extract_strided_slice %92 {offsets = [24, 0], sizes = [24, 64], strides = [1, 1]} : vector<48x64xf32> to vector<24x64xf32>
    %95 = arith.index_cast %c1_i32 : i32 to index
    %c0_37 = arith.constant 0 : index
    %c0_38 = arith.constant 0 : index
    %96 = vector.load %arg4[%95, %c0_37, %c0_38] : memref<2x24x64xf32, #tpu.memory_space<vmem>>, vector<1x24x64xf32>
    %97 = vector.shape_cast %96 : vector<1x24x64xf32> to vector<24x64xf32>
    %98 = arith.index_cast %c1_i32 : i32 to index
    %c0_39 = arith.constant 0 : index
    %c0_40 = arith.constant 0 : index
    %99 = vector.load %arg5[%98, %c0_39, %c0_40] : memref<2x24x64xf32, #tpu.memory_space<vmem>>, vector<1x24x64xf32>
    %100 = vector.shape_cast %99 : vector<1x24x64xf32> to vector<24x64xf32>
    %101 = arith.mulf %93, %97 : vector<24x64xf32>
    %102 = arith.mulf %94, %100 : vector<24x64xf32>
    %103 = arith.subf %101, %102 : vector<24x64xf32>
    %104 = arith.mulf %93, %100 : vector<24x64xf32>
    %105 = arith.mulf %94, %97 : vector<24x64xf32>
    %106 = arith.addf %104, %105 : vector<24x64xf32>
    %107 = tpu.concatenate %103, %106 in 0 : vector<24x64xf32>, vector<24x64xf32> -> vector<48x64xf32>
    %108 = arith.truncf %107 : vector<48x64xf32> to vector<48x64xbf16>
    %cst_41 = arith.constant dense<0.000000e+00> : vector<16x64xf32>
    %109 = tpu.matmul %3, %108, %cst_41 {dimension_numbers = #tpu.dot_dimension_numbers<[1], [0], [0], [1], [0, 0, 1, 1], [], []>} : vector<16x48xbf16>, vector<48x64xbf16>, vector<16x64xf32> -> vector<16x64xf32>
    %110 = arith.index_cast %c1_i32 : i32 to index
    %c0_42 = arith.constant 0 : index
    %c0_43 = arith.constant 0 : index
    %111 = vector.load %arg6[%110, %c0_42, %c0_43] : memref<2x1x64xf32, #tpu.memory_space<vmem>>, vector<1x1x64xf32>
    %112 = vector.shape_cast %111 : vector<1x1x64xf32> to vector<1x64xf32>
    %113 = vector.broadcast %112 : vector<1x64xf32> to vector<16x64xf32>
    %114 = arith.mulf %90, %113 : vector<16x64xf32>
    %115 = arith.addf %109, %114 : vector<16x64xf32>
    %cst_44 = arith.constant 5.000000e-01 : f32
    %116 = vector.broadcast %cst_44 : f32 to vector<16x64xf32>
    %117 = arith.mulf %116, %115 : vector<16x64xf32>
    %cst_45 = arith.constant 4.471500e-02 : f32
    %118 = vector.broadcast %cst_45 : f32 to vector<16x64xf32>
    %119 = arith.mulf %118, %115 : vector<16x64xf32>
    %120 = arith.mulf %119, %115 : vector<16x64xf32>
    %121 = arith.mulf %120, %115 : vector<16x64xf32>
    %122 = arith.addf %115, %121 : vector<16x64xf32>
    %cst_46 = arith.constant 0.797884583 : f32
    %123 = vector.broadcast %cst_46 : f32 to vector<16x64xf32>
    %124 = arith.mulf %123, %122 : vector<16x64xf32>
    %125 = math.tanh %124 : vector<16x64xf32>
    %cst_47 = arith.constant 1.000000e+00 : f32
    %126 = vector.broadcast %cst_47 : f32 to vector<16x64xf32>
    %127 = arith.addf %126, %125 : vector<16x64xf32>
    %128 = arith.mulf %117, %127 : vector<16x64xf32>
    %129 = arith.truncf %128 : vector<16x64xf32> to vector<16x64xbf16>
    %130 = arith.index_cast %c1_i32 : i32 to index
    %c0_48 = arith.constant 0 : index
    %c0_49 = arith.constant 0 : index
    %131 = vector.load %arg7[%130, %c0_48, %c0_49] : memref<2x64x64xbf16, #tpu.memory_space<vmem>>, vector<1x64x64xbf16>
    %132 = vector.shape_cast %131 : vector<1x64x64xbf16> to vector<64x64xbf16>
    %cst_50 = arith.constant dense<0.000000e+00> : vector<16x64xf32>
    %133 = tpu.matmul %129, %132, %cst_50 {dimension_numbers = #tpu.dot_dimension_numbers<[1], [0], [0], [1], [0, 0, 1, 1], [], []>} : vector<16x64xbf16>, vector<64x64xbf16>, vector<16x64xf32> -> vector<16x64xf32>
    %134 = arith.index_cast %c1_i32 : i32 to index
    %c0_51 = arith.constant 0 : index
    %c0_52 = arith.constant 0 : index
    %135 = vector.load %arg9[%134, %c0_51, %c0_52] : memref<2x1x64xf32, #tpu.memory_space<vmem>>, vector<1x1x64xf32>
    %136 = vector.shape_cast %135 : vector<1x1x64xf32> to vector<1x64xf32>
    %137 = vector.broadcast %136 : vector<1x64xf32> to vector<16x64xf32>
    %138 = arith.addf %133, %137 : vector<16x64xf32>
    %139 = arith.index_cast %c1_i32 : i32 to index
    %c0_53 = arith.constant 0 : index
    %c0_54 = arith.constant 0 : index
    %140 = vector.load %arg8[%139, %c0_53, %c0_54] : memref<2x64x64xbf16, #tpu.memory_space<vmem>>, vector<1x64x64xbf16>
    %141 = vector.shape_cast %140 : vector<1x64x64xbf16> to vector<64x64xbf16>
    %cst_55 = arith.constant dense<0.000000e+00> : vector<16x64xf32>
    %142 = tpu.matmul %129, %141, %cst_55 {dimension_numbers = #tpu.dot_dimension_numbers<[1], [0], [0], [1], [0, 0, 1, 1], [], []>} : vector<16x64xbf16>, vector<64x64xbf16>, vector<16x64xf32> -> vector<16x64xf32>
    %143 = arith.index_cast %c1_i32 : i32 to index
    %c0_56 = arith.constant 0 : index
    %c0_57 = arith.constant 0 : index
    %144 = vector.load %arg10[%143, %c0_56, %c0_57] : memref<2x1x64xf32, #tpu.memory_space<vmem>>, vector<1x1x64xf32>
    %145 = vector.shape_cast %144 : vector<1x1x64xf32> to vector<1x64xf32>
    %146 = vector.broadcast %145 : vector<1x64xf32> to vector<16x64xf32>
    %147 = arith.addf %142, %146 : vector<16x64xf32>
    %148 = arith.negf %147 : vector<16x64xf32>
    %149 = math.exp %148 : vector<16x64xf32>
    %cst_58 = arith.constant 1.000000e+00 : f32
    %150 = vector.broadcast %cst_58 : f32 to vector<16x64xf32>
    %151 = arith.addf %150, %149 : vector<16x64xf32>
    %152 = arith.divf %150, %151 : vector<16x64xf32>
    %153 = arith.mulf %138, %152 : vector<16x64xf32>
    %154 = arith.addf %153, %90 : vector<16x64xf32>
    %155 = arith.mulf %154, %154 : vector<16x64xf32>
    %156 = tpu.concatenate %154, %155 in 0 : vector<16x64xf32>, vector<16x64xf32> -> vector<32x64xf32>
    %cst_59 = arith.constant dense<0.000000e+00> : vector<32x64xf32>
    %157 = tpu.matmul %156, %4, %cst_59 {dimension_numbers = #tpu.dot_dimension_numbers<[1], [0], [0], [1], [0, 0, 1, 1], [], []>} : vector<32x64xf32>, vector<64x64xf32>, vector<32x64xf32> -> vector<32x64xf32>
    %158 = vector.extract_strided_slice %157 {offsets = [0, 0], sizes = [16, 64], strides = [1, 1]} : vector<32x64xf32> to vector<16x64xf32>
    %159 = vector.extract_strided_slice %157 {offsets = [16, 0], sizes = [16, 64], strides = [1, 1]} : vector<32x64xf32> to vector<16x64xf32>
    %160 = arith.mulf %158, %158 : vector<16x64xf32>
    %161 = arith.subf %159, %160 : vector<16x64xf32>
    %162 = arith.subf %154, %158 : vector<16x64xf32>
    %cst_60 = arith.constant 9.99999974E-6 : f32
    %163 = vector.broadcast %cst_60 : f32 to vector<16x64xf32>
    %164 = arith.addf %161, %163 : vector<16x64xf32>
    %165 = math.rsqrt %164 : vector<16x64xf32>
    %166 = arith.mulf %162, %165 : vector<16x64xf32>
    %167 = arith.index_cast %c1_i32 : i32 to index
    %c0_61 = arith.constant 0 : index
    %c0_62 = arith.constant 0 : index
    %168 = vector.load %arg11[%167, %c0_61, %c0_62] : memref<2x1x64xf32, #tpu.memory_space<vmem>>, vector<1x1x64xf32>
    %169 = vector.shape_cast %168 : vector<1x1x64xf32> to vector<1x64xf32>
    %170 = vector.broadcast %169 : vector<1x64xf32> to vector<16x64xf32>
    %171 = arith.mulf %166, %170 : vector<16x64xf32>
    %172 = arith.index_cast %c1_i32 : i32 to index
    %c0_63 = arith.constant 0 : index
    %c0_64 = arith.constant 0 : index
    %173 = vector.load %arg12[%172, %c0_63, %c0_64] : memref<2x1x64xf32, #tpu.memory_space<vmem>>, vector<1x1x64xf32>
    %174 = vector.shape_cast %173 : vector<1x1x64xf32> to vector<1x64xf32>
    %175 = vector.broadcast %174 : vector<1x64xf32> to vector<16x64xf32>
    %176 = arith.addf %171, %175 : vector<16x64xf32>
    %c2_i32 = arith.constant 2 : i32
    %cst_65 = arith.constant dense<0.000000e+00> : vector<64xf32>
    %177 = vector.multi_reduction <add>, %176, %cst_65 [0] : vector<16x64xf32> to vector<64xf32>
    %178 = vector.shape_cast %177 : vector<64xf32> to vector<1x64xf32>
    %cst_66 = arith.constant 1.600000e+01 : f32
    %179 = vector.broadcast %cst_66 : f32 to vector<1x64xf32>
    %180 = arith.divf %178, %179 : vector<1x64xf32>
    %181 = arith.truncf %180 : vector<1x64xf32> to vector<1x64xbf16>
    %c0_67 = arith.constant 0 : index
    %c0_68 = arith.constant 0 : index
    %182 = vector.load %arg14[%c0_67, %c0_68] : memref<64x256xbf16, #tpu.memory_space<vmem>>, vector<64x256xbf16>
    %cst_69 = arith.constant dense<0.000000e+00> : vector<1x256xf32>
    %183 = tpu.matmul %181, %182, %cst_69 {dimension_numbers = #tpu.dot_dimension_numbers<[1], [0], [0], [1], [0, 0, 1, 1], [], []>} : vector<1x64xbf16>, vector<64x256xbf16>, vector<1x256xf32> -> vector<1x256xf32>
    %c0_70 = arith.constant 0 : index
    %c0_71 = arith.constant 0 : index
    %184 = vector.load %arg15[%c0_70, %c0_71] : memref<1x256xf32, #tpu.memory_space<vmem>>, vector<1x256xf32>
    %185 = arith.addf %183, %184 : vector<1x256xf32>
    %c0_72 = arith.constant 0 : index
    %c0_73 = arith.constant 0 : index
    %c0_74 = arith.constant 0 : index
    %186 = vector.load %arg16[%c0_72, %c0_73, %c0_74] : memref<1x1x256xf32, #tpu.memory_space<vmem>>, vector<1x1x256xf32>
    %187 = vector.shape_cast %186 : vector<1x1x256xf32> to vector<1x256xf32>
    %188 = vector.shape_cast %185 : vector<1x256xf32> to vector<1x1x256xf32>
    tpu.vector_store %arg16[%c0_72, %c0_73, %c0_74], %188 {strides = array<i32>} : memref<1x1x256xf32, #tpu.memory_space<vmem>>, vector<1x1x256xf32>,
    return
  }
  func.func @transform_0(%arg0: i32) -> (i32, i32, i32) {
    %c0_i32 = arith.constant 0 : i32
    %c0_i32_0 = arith.constant 0 : i32
    %c0_i32_1 = arith.constant 0 : i32
    return %arg0, %c0_i32, %c0_i32_0 : i32, i32, i32
  }
  func.func @transform_1(%arg0: i32) -> (i32, i32) {
    %c0_i32 = arith.constant 0 : i32
    %c0_i32_0 = arith.constant 0 : i32
    %c0_i32_1 = arith.constant 0 : i32
    return %c0_i32, %c0_i32_0 : i32, i32
  }
  func.func @transform_2(%arg0: i32) -> (i32, i32) {
    %c0_i32 = arith.constant 0 : i32
    %c0_i32_0 = arith.constant 0 : i32
    %c0_i32_1 = arith.constant 0 : i32
    return %c0_i32, %c0_i32_0 : i32, i32
  }
  func.func @transform_3(%arg0: i32) -> (i32, i32, i32) {
    %c0_i32 = arith.constant 0 : i32
    %c0_i32_0 = arith.constant 0 : i32
    %c0_i32_1 = arith.constant 0 : i32
    %c0_i32_2 = arith.constant 0 : i32
    return %c0_i32, %c0_i32_0, %c0_i32_1 : i32, i32, i32
  }
  func.func @transform_4(%arg0: i32) -> (i32, i32, i32) {
    %c0_i32 = arith.constant 0 : i32
    %c0_i32_0 = arith.constant 0 : i32
    %c0_i32_1 = arith.constant 0 : i32
    %c0_i32_2 = arith.constant 0 : i32
    return %c0_i32, %c0_i32_0, %c0_i32_1 : i32, i32, i32
  }
  func.func @transform_5(%arg0: i32) -> (i32, i32, i32) {
    %c0_i32 = arith.constant 0 : i32
    %c0_i32_0 = arith.constant 0 : i32
    %c0_i32_1 = arith.constant 0 : i32
    %c0_i32_2 = arith.constant 0 : i32
    return %c0_i32, %c0_i32_0, %c0_i32_1 : i32, i32, i32
  }
  func.func @transform_6(%arg0: i32) -> (i32, i32, i32) {
    %c0_i32 = arith.constant 0 : i32
    %c0_i32_0 = arith.constant 0 : i32
    %c0_i32_1 = arith.constant 0 : i32
    %c0_i32_2 = arith.constant 0 : i32
    return %c0_i32, %c0_i32_0, %c0_i32_1 : i32, i32, i32
  }
  func.func @transform_7(%arg0: i32) -> (i32, i32, i32) {
    %c0_i32 = arith.constant 0 : i32
    %c0_i32_0 = arith.constant 0 : i32
    %c0_i32_1 = arith.constant 0 : i32
    %c0_i32_2 = arith.constant 0 : i32
    return %c0_i32, %c0_i32_0, %c0_i32_1 : i32, i32, i32
  }
  func.func @transform_8(%arg0: i32) -> (i32, i32, i32) {
    %c0_i32 = arith.constant 0 : i32
    %c0_i32_0 = arith.constant 0 : i32
    %c0_i32_1 = arith.constant 0 : i32
    %c0_i32_2 = arith.constant 0 : i32
    return %c0_i32, %c0_i32_0, %c0_i32_1 : i32, i32, i32
  }
  func.func @transform_9(%arg0: i32) -> (i32, i32, i32) {
    %c0_i32 = arith.constant 0 : i32
    %c0_i32_0 = arith.constant 0 : i32
    %c0_i32_1 = arith.constant 0 : i32
    %c0_i32_2 = arith.constant 0 : i32
    return %c0_i32, %c0_i32_0, %c0_i32_1 : i32, i32, i32
  }
  func.func @transform_10(%arg0: i32) -> (i32, i32, i32) {
    %c0_i32 = arith.constant 0 : i32
    %c0_i32_0 = arith.constant 0 : i32
    %c0_i32_1 = arith.constant 0 : i32
    %c0_i32_2 = arith.constant 0 : i32
    return %c0_i32, %c0_i32_0, %c0_i32_1 : i32, i32, i32
  }
  func.func @transform_11(%arg0: i32) -> (i32, i32, i32) {
    %c0_i32 = arith.constant 0 : i32
    %c0_i32_0 = arith.constant 0 : i32
    %c0_i32_1 = arith.constant 0 : i32
    %c0_i32_2 = arith.constant 0 : i32
    return %c0_i32, %c0_i32_0, %c0_i32_1 : i32, i32, i32
  }
  func.func @transform_12(%arg0: i32) -> (i32, i32) {
    %c0_i32 = arith.constant 0 : i32
    %c0_i32_0 = arith.constant 0 : i32
    %c0_i32_1 = arith.constant 0 : i32
    return %c0_i32, %c0_i32_0 : i32, i32
  }
  func.func @transform_13(%arg0: i32) -> (i32, i32) {
    %c0_i32 = arith.constant 0 : i32
    %c0_i32_0 = arith.constant 0 : i32
    %c0_i32_1 = arith.constant 0 : i32
    return %c0_i32, %c0_i32_0 : i32, i32
  }
  func.func @transform_14(%arg0: i32) -> (i32, i32) {
    %c0_i32 = arith.constant 0 : i32
    %c0_i32_0 = arith.constant 0 : i32
    %c0_i32_1 = arith.constant 0 : i32
    return %c0_i32, %c0_i32_0 : i32, i32
  }
  func.func @transform_15(%arg0: i32) -> (i32, i32, i32) {
    %c0_i32 = arith.constant 0 : i32
    %c0_i32_0 = arith.constant 0 : i32
    %c0_i32_1 = arith.constant 0 : i32
    return %arg0, %c0_i32, %c0_i32_0 : i32, i32, i32
  }
}

</mosaic_0001>

<bundles_post_ra>
// kernel: tpu_custom_call.1
= control target key start
LH: loop header
LB: loop body
LE: loop exit
PB: predicated region body
PF: predicated region fallthrough
CT: control target
= control target key end

     0   :  { %20 = vsyncpa [#allocation3], 0  ;;  %s2111_s0 = inlined_call_operand.vmem [shape: f32[1,16,64], index: 0, kind: input, shape index: {}]   ;;  %s2112_s1 = inlined_call_operand.vmem [shape: bf16[48,16], index: 1, kind: input, shape index: {}]   ;;  %s2113_s2 = inlined_call_operand.vmem [shape: bf16[16,48], index: 2, kind: input, shape index: {}]   ;;  %s2114_s3 = inlined_call_operand.hbm [shape: f32[2,24,64], index: 3, kind: input, shape index: {}]   ;;  %s2115_s4 = inlined_call_operand.hbm [shape: f32[2,24,64], index: 4, kind: input, shape index: {}]   ;;  %s2116_s5 = inlined_call_operand.vmem [shape: f32[2,1,64], index: 5, kind: input, shape index: {}]   ;;  %s2117_s6 = inlined_call_operand.hbm [shape: bf16[2,64,64], index: 6, kind: input, shape index: {}]   ;;  %s2118_s7 = inlined_call_operand.hbm [shape: bf16[2,64,64], index: 7, kind: input, shape index: {}]   ;;  %s2119_s8 = inlined_call_operand.vmem [shape: f32[2,1,64], index: 8, kind: input, shape index: {}]   ;;  %s2120_s9 = inlined_call_operand.vmem [shape: f32[2,1,64], index: 9, kind: input, shape index: {}]   ;;  %s2121_s10 = inlined_call_operand.vmem [shape: f32[2,1,64], index: 10, kind: input, shape index: {}]   ;;  %s2122_s11 = inlined_call_operand.vmem [shape: f32[2,1,64], index: 11, kind: input, shape index: {}]   ;;  %s2123_s12 = inlined_call_operand.hbm [shape: f32[64,64], index: 12, kind: input, shape index: {}]   ;;  %s2124_s13 = inlined_call_operand.hbm [shape: bf16[64,256], index: 13, kind: input, shape index: {}]   ;;  %s2125_s14 = inlined_call_operand.vmem [shape: f32[1,256], index: 14, kind: input, shape index: {}]   ;;  %s2126_s15 = inlined_call_operand.hbm [shape: f32[1,1,256], index: 15, kind: output, shape index: {}]  }
   0x1   :  { %21 = vsyncpa [#allocation6], 0 }
   0x2   :  { %22 = vsyncpa [#allocation9], 0 }
   0x3   :  { %23 = vsyncpa [#allocation12], 0 }
   0x4   :  { %24 = vsyncpa [#allocation4], 0  ;;  %s1776_s18 = smov [#allocation5]  }
   0x5   :  { %s48_s19 = sshll.u32 %s1776_s18, 4  ;;  %s49_s19 = int_to_ptr.vmem [resolvable:$true] %s48_s19 }
   0x6   :  { %s1634_s20 = scalar_lea.vmem %s49_s19, 768  ;;  %p1639_p1 = scmp.lt.s32.totalorder %s49_s19, %s49_s19 }
   0x7   :  { %p1635_p0 = scmp.ne.s32.totalorder %s49_s19, %s1634_s20  ;;  %p1640_p2 = scmp.lt.s32.totalorder %s1634_s20, %s1634_s20 }
   0x9   :  { %p1641_p3 = por %p1640_p2, %p1639_p1 }
   0xb   :  { %p1642_p4 = pnand %p1641_p3, %p1635_p0 }
   0xd   :  { %1645 = shalt.err (!%p1642_p4)
}
   0xe   :  { %s1777_s21 = smov 128   ;;  %s1778_s22 = smov 8  }
   0xf   :  { %54 = dma.hbm_to_vmem [thread:$0]  %s2115_s4, 768, %s49_s19, [#allocation6], %s1777_s21, %s1777_s21, %s1778_s22  }
  0x10   :  { %s1779_s25 = smov [#allocation8]   ;;  %s1780_s27 = smov [#allocation2]  }
  0x11   :  { %s74_s26 = sshll.u32 %s1779_s25, 4  ;;  %s36_s28 = sshll.u32 %s1780_s27, 4  ;;  %s75_s26 = int_to_ptr.vmem [resolvable:$true] %s74_s26  ;;  %s37_s28 = int_to_ptr.vmem [resolvable:$true] %s36_s28 }
  0x12   :  { %s1654_s29 = scalar_lea.vmem %s75_s26, 1024  ;;  %p1659_p6 = scmp.lt.s32.totalorder %s75_s26, %s75_s26 }
  0x13   :  { %p1655_p5 = scmp.ne.s32.totalorder %s75_s26, %s1654_s29  ;;  %p1660_p7 = scmp.lt.s32.totalorder %s1654_s29, %s1654_s29 }
  0x15   :  { %p1661_p8 = por %p1660_p7, %p1659_p6 }
  0x17   :  { %p1662_p9 = pnand %p1661_p8, %p1655_p5 }
  0x19   :  { %1665 = shalt.err (!%p1662_p9)
}
  0x1a   :  { %s1781_s30 = smov 64   ;;  %s1782_s16 = smov 4  }
  0x1b   :  { %80 = dma.hbm_to_vmem [thread:$0]  %s2118_s7, 1024, %s75_s26, [#allocation9], %s1781_s30, %s1781_s30, %s1782_s16  }
  0x1c   :  { %s1674_s4 = scalar_lea.vmem %s37_s28, 768  ;;  %p1679_p11 = scmp.lt.s32.totalorder %s37_s28, %s37_s28 }
  0x1d   :  { %p1675_p10 = scmp.ne.s32.totalorder %s37_s28, %s1674_s4  ;;  %p1680_p12 = scmp.lt.s32.totalorder %s1674_s4, %s1674_s4 }
  0x1f   :  { %p1681_p13 = por %p1680_p12, %p1679_p11 }
  0x21   :  { %p1682_p0 = pnand %p1681_p13, %p1675_p10 }
  0x23   :  { %1685 = shalt.err (!%p1682_p0)
}
  0x24   :  { %42 = dma.hbm_to_vmem [thread:$0]  %s2114_s3, 768, %s37_s28, [#allocation3], %s1777_s21, %s1777_s21, %s1778_s22  }
  0x25   :  { %s1783_s23 = smov [#allocation7]   ;;  %s1784_s25 = smov [#allocation10]  }
  0x26   :  { %s62_s24 = sshll.u32 %s1783_s23, 4  ;;  %s94_s7 = sshll.u32 %s1784_s25, 4  ;;  %s63_s24 = int_to_ptr.vmem [resolvable:$true] %s62_s24  ;;  %s95_s7 = int_to_ptr.vmem [resolvable:$true] %s94_s7 }
  0x27   :  { %s1694_s26 = scalar_lea.vmem %s63_s24, 1024  ;;  %p1699_p2 = scmp.lt.s32.totalorder %s63_s24, %s63_s24 }
  0x28   :  { %p1695_p1 = scmp.ne.s32.totalorder %s63_s24, %s1694_s26  ;;  %p1700_p3 = scmp.lt.s32.totalorder %s1694_s26, %s1694_s26 }
  0x2a   :  { %p1701_p4 = por %p1700_p3, %p1699_p2 }
  0x2c   :  { %p1702_p5 = pnand %p1701_p4, %p1695_p1 }
  0x2e   :  { %1705 = shalt.err (!%p1702_p5)
}
  0x2f   :  { %68 = dma.hbm_to_vmem [thread:$0]  %s2117_s6, 1024, %s63_s24, [#allocation6], %s1781_s30, %s1781_s30, %s1782_s16  }
  0x30   :  { %s1714_s17 = scalar_lea.vmem %s95_s7, 1024  ;;  %p1719_p7 = scmp.lt.s32.totalorder %s95_s7, %s95_s7 }
  0x31   :  { %p1715_p6 = scmp.ne.s32.totalorder %s95_s7, %s1714_s17  ;;  %p1720_p8 = scmp.lt.s32.totalorder %s1714_s17, %s1714_s17 }
  0x33   :  { %p1721_p9 = por %p1720_p8, %p1719_p7 }
  0x35   :  { %p1722_p10 = pnand %p1721_p9, %p1715_p6 }
  0x37   :  { %1725 = shalt.err (!%p1722_p10)
}
  0x38   :  { %100 = dma.hbm_to_vmem [thread:$0]  %s2123_s12, 1024, %s95_s7, [#allocation9], %s1777_s21, %s1777_s21, %s1778_s22  }
  0x39   :  { %s1785_s18 = smov [#allocation11]  }
  0x3a   :  { %s106_s4 = sshll.u32 %s1785_s18, 4  ;;  %s107_s4 = int_to_ptr.vmem [resolvable:$true] %s106_s4 }
  0x3b   :  { %s1734_s19 = scalar_lea.vmem %s107_s4, 1024  ;;  %p1739_p12 = scmp.lt.s32.totalorder %s107_s4, %s107_s4 }
  0x3c   :  { %p1735_p11 = scmp.ne.s32.totalorder %s107_s4, %s1734_s19  ;;  %p1740_p13 = scmp.lt.s32.totalorder %s1734_s19, %s1734_s19 }
  0x3e   :  { %p1741_p0 = por %p1740_p13, %p1739_p12 }
  0x40   :  { %p1742_p1 = pnand %p1741_p0, %p1735_p11 }
  0x42   :  { %1745 = shalt.err (!%p1742_p1)
}
  0x43   :  { %112 = dma.hbm_to_vmem [thread:$0]  %s2124_s13, 1024, %s107_s4, [#allocation12], %s1777_s21, %s1777_s21, %s1778_s22  }
  0x44   :  { %1766 = dma.done.wait [#allocation3], 768  }
  0x45   :  { %1767 = vsyncadd [#allocation3], 4294966528 }
  0x46   :  { %1768 = dma.done.wait [#allocation6], 1792  }
  0x47   :  { %1769 = vsyncadd [#allocation6], 4294965504 }
  0x48   :  { %1770 = dma.done.wait [#allocation9], 2048  }
  0x49   :  { %1771 = vsyncadd [#allocation9], 4294965248 }
  0x4a   :  { %1772 = dma.done.wait [#allocation12], 1024  }
  0x4b   :  { %1773 = vsyncadd [#allocation12], 4294966272  ;;  %v1786_v0 = vmov 0.0   ;;  %vm1787_vm0 = vmmov 0   ;;  %v1910_v1 = vld [vmem:[%s2111_s0] sm:$0xff]  ;;  %v1915_v2 = vld [vmem:[%s2111_s0 + $0x8] sm:$0xff] }
  0x4c   :  { %1405 = vmatprep.subr.bf16.mxu0 %v1786_v0  ;;  %1545 = vmatprep.subr.bf16.mxu1 %v1786_v0  ;;  %v152_v3 = vpack.c.bf16 %v1915_v2, %v1910_v1  ;;  %v1922_v4 = vld [vmem:[%s2112_s1] sm:$0xff]   ;;  %v1927_v5 = vld [vmem:[%s2112_s1 + $0x10] sm:$0xff]   ;;  %vm168_vm1 = vcmask 130048   ;;  %v1942_v6 = vld [vmem:[%s2112_s1 + $0x8] sm:$0xff]   ;;  %vm276_vm2 = vcmask 392192   ;;  %vm379_vm3 = vcmask 523264  }
  0x4d   :  { %1407 = vmatprep.mubr.msk.bf16.mxu0 %vm1787_vm0, %v1786_v0  ;;  %1415 = vmatprep.mubr.msk.bf16.mxu1 %vm1787_vm0, %v1786_v0  ;;  %v236_v11 = vld [vmem:[#allocation2 + $0x8] sm:$0xff]  ;;  %v239_v12 = vld [vmem:[#allocation5 + $0x8] sm:$0xff]  ;;  %v237_v15 = vld [vmem:[#allocation2 + $0x10] sm:$0xff]  ;;  %s1790_s20 = smov [#allocation13]  }
  0x4e   :  { %1406 = vmatpush3.bf16.msra.mxu0 %v152_v3  ;;  %1546 = vmatpush3.bf16.msra.mxu1 %v152_v3  ;;  %v240_v20 = vld [vmem:[#allocation5 + $0x10] sm:$0xff]  ;;  %v238_v22 = vld [vmem:[#allocation5] sm:$0xff]  ;;  %v1566_v47 = vld [vmem:[#allocation7 + $0x18] sm:$0xff]   ;;  %s1265_s23 = sshll.u32 %s1790_s20, 4  ;;  %s1266_s23 = int_to_ptr.vmem [resolvable:$true] %s1265_s23 }
  0x4f   :  { %1419 = vmatprep.subr.bf16.mxu1 %v1786_v0  ;;  %1429 = vmatprep.subr.bf16.mxu0 %v1786_v0  ;;  %v235_v26 = vld [vmem:[#allocation2] sm:$0xff]  ;;  %v1567_v48 = vld [vmem:[#allocation8 + $0x18] sm:$0xff]   ;;  %v1568_v49 = vld [vmem:[#allocation7 + $0x10] sm:$0xff]   ;;  %s1746_s24 = scalar_lea.vmem %s1266_s23, 32  ;;  %p1751_p3 = scmp.lt.s32.totalorder %s1266_s23, %s1266_s23 }
  0x50   :  { %v1953_v46 = vld [vmem:[%s2113_s2] sm:$0xff]   ;;  %v1569_v50 = vld [vmem:[#allocation8 + $0x10] sm:$0xff]   ;;  %v1570_v51 = vld [vmem:[#allocation7 + $0x8] sm:$0xff]   ;;  %p1747_p2 = scmp.ne.s32.totalorder %s1266_s23, %s1746_s24  ;;  %p1752_p4 = scmp.lt.s32.totalorder %s1746_s24, %s1746_s24 }
  0x51   :  { %1408 = vmatmul.mubr.msk.bf16.vlgmr.msra.gmra.mxu0 %vm168_vm1, %v1922_v4  ;;  %1416 = vmatmul.mubr.msk.bf16.vlgmr.msra.gmra.mxu1 %vm168_vm1, %v1927_v5  ;;  %v1571_v52 = vld [vmem:[#allocation8 + $0x8] sm:$0xff]   ;;  %v1572_v53 = vld [vmem:[#allocation7] sm:$0xff]  }
  0x52   :  { %1411 = vmatprep.mubr.msk.bf16.mxu0 %vm1787_vm0, %v1786_v0  ;;  %1425 = vmatprep.mubr.msk.bf16.mxu1 %vm1787_vm0, %v1786_v0  ;;  %v1573_v54 = vld [vmem:[#allocation8] sm:$0xff]   ;;  %p1753_p5 = por %p1752_p4, %p1751_p3 }
  0x53   :  { %1430 = vmatpush3.bf16.msra.mxu0 %v1566_v47  ;;  %v1283_v55 = vld [vmem:[%s2116_s5] ss:$0 sm:$0xff] }
  0x54   :  { %1431 = vmatprep.subr.bf16.mxu0 %v1786_v0  ;;  %v269_v56 = vmul.f32 %v1283_v55, %v1910_v1  ;;  %v270_v59 = vmul.f32 %v1283_v55, %v1915_v2  ;;  %p1754_p6 = pnand %p1753_p5, %p1747_p2 }
  0x57   :  { %1432 = vmatpush3.bf16.msra.mxu0 %v1568_v49 }
  0x58   :  { %1433 = vmatprep.subr.bf16.mxu0 %v1786_v0 }
  0x59   :  { %1412 = vmatmul.mubr.msk.bf16.gmra.mxu0 %vm168_vm1, %v1942_v6 }
  0x5a   :  { %1437 = vmatprep.mubr.msk.bf16.mxu0 %vm1787_vm0, %v1786_v0 }
  0x5b   :  { %1434 = vmatpush3.bf16.msra.mxu0 %v1570_v51  ;;  %v1286_v51 = vld [vmem:[%s2119_s8] ss:$0 sm:$0xff] }
  0x5c   :  { %1435 = vmatprep.subr.bf16.mxu0 %v1786_v0 }
  0x5f   :  { %1436 = vmatpush3.bf16.msra.mxu0 %v1572_v53 }
 0x111   :  { %v212_v7 = vpop.f32.mrf.mxu0  ;;  %v228_v8 = vpop.f32.mrf.mxu1 }
 0x112   :  { %v254_v18 = vmul.f32 %v236_v11, %v228_v8  ;;  %v250_v30 = vmul.f32 %v238_v22, %v212_v7  ;;  %v241_v36 = vmul.f32 %v235_v26, %v212_v7  ;;  %v245_v38 = vmul.f32 %v239_v12, %v228_v8 }
 0x113   :  { %v1409_v9 = vpop.f32.mrf.mxu0  ;;  %v1417_v10 = vpop.f32.mrf.mxu1 }
 0x115   :  { %v215_v13 = vpop.f32.mrf.mxu0  ;;  %v231_v14 = vpop.f32.mrf.mxu1 }
 0x116   :  { %v251_v19 = vmul.f32 %v239_v12, %v215_v13  ;;  %v255_v23 = vmul.f32 %v237_v15, %v231_v14  ;;  %v246_v32 = vmul.f32 %v240_v20, %v231_v14  ;;  %v242_v39 = vmul.f32 %v236_v11, %v215_v13 }
 0x117   :  { %v1410_v16 = vpop.f32.mrf.mxu0  ;;  %v1418_v17 = vpop.f32.mrf.mxu1 }
 0x118   :  { %v257_v27 = vadd.f32 %v254_v18, %v251_v19  ;;  %v248_v44 = vsub.f32 %v242_v39, %v245_v38 }
 0x119   :  { %v220_v21 = vpop.f32.mrf.mxu0 }
 0x11a   :  { %v252_v24 = vmul.f32 %v240_v20, %v220_v21  ;;  %v243_v28 = vmul.f32 %v237_v15, %v220_v21 }
 0x11b   :  { %v1413_v25 = vpop.f32.mrf.mxu0 }
 0x11c   :  { %v258_v29 = vadd.f32 %v255_v23, %v252_v24  ;;  %v249_v40 = vsub.f32 %v243_v28, %v246_v32  ;;  %v1976_v25 = vld [vmem:[#allocation10 + $0x38] sm:$0xff]  ;;  %v1986_v28 = vld [vmem:[#allocation10 + $0x20] sm:$0xff] }
 0x11d   :  { %v223_v31 = vpop.f32.mrf.mxu0  ;;  %1453 = vmatprep.subr.mxu0 %v1976_v25  ;;  %v2004_v32 = vld [vmem:[#allocation10] sm:$0xff] }
 0x11e   :  { %v261_v33 = vpack.c.bf16 %v258_v29, %v257_v27  ;;  %v244_v34 = vmul.f32 %v238_v22, %v223_v31  ;;  %v253_v35 = vmul.f32 %v235_v26, %v223_v31  ;;  %v1978_v26 = vld [vmem:[#allocation10 + $0x30] sm:$0xff]  ;;  %v1982_v27 = vld [vmem:[#allocation10 + $0x28] sm:$0xff]  ;;  %v1990_v29 = vld [vmem:[#allocation10 + $0x18] sm:$0xff] }
 0x11f   :  { %v1414_v37 = vpop.f32.mrf.mxu0  ;;  %v1998_v31 = vld [vmem:[#allocation10 + $0x8] sm:$0xff] }
 0x120   :  { %v256_v41 = vadd.f32 %v253_v35, %v250_v30  ;;  %1420 = vmatpush3.bf16.msra.mxu1 %v261_v33  ;;  %v247_v42 = vsub.f32 %v241_v36, %v244_v34  ;;  %v1994_v30 = vld [vmem:[#allocation10 + $0x10] sm:$0xff]  ;;  %v1292_v33 = vld [vmem:[%s2120_s9] ss:$0 sm:$0xff] }
 0x121   :  { %1421 = vmatprep.subr.bf16.mxu1 %v1786_v0 }
 0x122   :  { %v260_v43 = vpack.c.bf16 %v256_v41, %v249_v40  ;;  %v259_v45 = vpack.c.bf16 %v248_v44, %v247_v42 }
 0x124   :  { %1422 = vmatpush3.bf16.msra.mxu1 %v260_v43 }
 0x125   :  { %1423 = vmatprep.subr.bf16.mxu1 %v1786_v0 }
 0x128   :  { %1424 = vmatpush3.bf16.msra.mxu1 %v259_v45 }
 0x129   :  { %1441 = vmatprep.subr.bf16.mxu1 %v1786_v0 }
 0x12b   :  { %1426 = vmatmul.mubr.msk.bf16.vlgmr.msra.gmra.mxu1 %vm276_vm2, %v1953_v46 }
 0x12c   :  { %1449 = vmatprep.mubr.msk.bf16.mxu1 %vm1787_vm0, %v1786_v0  ;;  %1442 = vmatpush3.bf16.msra.mxu1 %v1567_v48 }
 0x12d   :  { %1443 = vmatprep.subr.bf16.mxu1 %v1786_v0 }
 0x130   :  { %1444 = vmatpush3.bf16.msra.mxu1 %v1569_v50 }
 0x131   :  { %1445 = vmatprep.subr.bf16.mxu1 %v1786_v0 }
 0x134   :  { %1446 = vmatpush3.bf16.msra.mxu1 %v1571_v52 }
 0x135   :  { %1447 = vmatprep.subr.bf16.mxu1 %v1786_v0 }
 0x138   :  { %1448 = vmatpush3.bf16.msra.mxu1 %v1573_v54 }
 0x139   :  { %1475 = vmatprep.subr.bf16.mxu1 %v1786_v0 }
 0x1eb   :  { %v314_v57 = vpop.f32.mrf.mxu1 }
 0x1ec   :  { %v315_v58 = vadd.f32 %v314_v57, %v269_v56 }
 0x1ed   :  { %v1427_v60 = vpop.f32.mrf.mxu1 }
 0x1ee   :  { %v323_v61 = vmul.f32 0.044715, %v315_v58  ;;  %v321_v19 = vmul.f32 0.5, %v315_v58 }
 0x1ef   :  { %v317_v62 = vpop.f32.mrf.mxu1 }
 0x1f0   :  { %v325_v63 = vmul.f32 %v323_v61, %v315_v58  ;;  %v318_v3 = vadd.f32 %v317_v62, %v270_v59 }
 0x1f1   :  { %v1428_v7 = vpop.f32.mrf.mxu1 }
 0x1f2   :  { %v327_v8 = vmul.f32 %v325_v63, %v315_v58  ;;  %v324_v9 = vmul.f32 0.044715, %v318_v3  ;;  %v322_v20 = vmul.f32 0.5, %v318_v3 }
 0x1f4   :  { %v329_v10 = vadd.f32 %v327_v8, %v315_v58  ;;  %v326_v11 = vmul.f32 %v324_v9, %v318_v3 }
 0x1f6   :  { %v331_v12 = vmul.f32 0.7978846, %v329_v10  ;;  %v328_v13 = vmul.f32 %v326_v11, %v318_v3 }
 0x1f8   :  { %1594 = vtanh.f32 %v331_v12  ;;  %v330_v14 = vadd.f32 %v328_v13, %v318_v3 }
 0x1fa   :  { %v332_v15 = vmul.f32 0.7978846, %v330_v14  ;;  %v1304_v14 = vld [vmem:[%s2121_s10] ss:$0 sm:$0xff] }
 0x1fc   :  { %1596 = vtanh.f32 %v332_v15 }
 0x205   :  { %v1595_v16 = vpop.eup %1594 }
 0x206   :  { %v335_v17 = vadd.f32 1.0, %v1595_v16 }
 0x208   :  { %v337_v22 = vmul.f32 %v335_v17, %v321_v19 }
 0x209   :  { %v1597_v18 = vpop.eup %1596 }
 0x20a   :  { %v336_v21 = vadd.f32 1.0, %v1597_v18 }
 0x20c   :  { %v338_v23 = vmul.f32 %v336_v21, %v322_v20  ;;  %v1305_v20 = vld [vmem:[%s2122_s11] ss:$0 sm:$0xff] }
 0x20e   :  { %v339_v24 = vpack.c.bf16 %v338_v23, %v337_v22 }
 0x210   :  { %1438 = vmatmul.mubr.msk.bf16.vlgmr.msra.gmra.mxu0 %vm379_vm3, %v339_v24  ;;  %1450 = vmatmul.mubr.msk.bf16.vlgmr.msra.gmra.mxu1 %vm379_vm3, %v339_v24 }
 0x211   :  { %1477 = vmatprep.mubr.msk.bf16.mxu1 %vm1787_vm0, %v1786_v0  ;;  %1454 = vmatpush3.msra.mxu0 %v1976_v25 }
 0x212   :  { %1455 = vmatprep.subr.mxu0 %v1978_v26 }
 0x213   :  { %1456 = vmatpush3.msra.mxu0 %v1978_v26 }
 0x214   :  { %1457 = vmatprep.subr.mxu0 %v1982_v27 }
 0x215   :  { %1458 = vmatpush3.msra.mxu0 %v1982_v27 }
 0x216   :  { %1459 = vmatprep.subr.mxu0 %v1986_v28 }
 0x217   :  { %1460 = vmatpush3.msra.mxu0 %v1986_v28 }
 0x218   :  { %1461 = vmatprep.subr.mxu0 %v1990_v29 }
 0x219   :  { %1462 = vmatpush3.msra.mxu0 %v1990_v29 }
 0x21a   :  { %1463 = vmatprep.subr.mxu0 %v1994_v30 }
 0x21b   :  { %1464 = vmatpush3.msra.mxu0 %v1994_v30 }
 0x21c   :  { %1465 = vmatprep.subr.mxu0 %v1998_v31 }
 0x21d   :  { %1466 = vmatpush3.msra.mxu0 %v1998_v31 }
 0x21e   :  { %1467 = vmatprep.subr.mxu0 %v2004_v32 }
 0x21f   :  { %1468 = vmatpush3.msra.mxu0 %v2004_v32 }
 0x220   :  { %1489 = vmatprep.subr.bf16.mxu0 %v1786_v0 }
 0x2d0   :  { %v417_v34 = vpop.f32.mrf.mxu0  ;;  %v497_v35 = vpop.f32.mrf.mxu1 }
 0x2d1   :  { %v498_v36 = vadd.f32 %v1292_v33, %v497_v35  ;;  %v418_v52 = vadd.f32 %v1286_v51, %v417_v34 }
 0x2d2   :  { %v1439_v37 = vpop.f32.mrf.mxu0  ;;  %v1451_v38 = vpop.f32.mrf.mxu1 }
 0x2d3   :  { %v1298_v39 = vmul.f32 -1.442695, %v498_v36 }
 0x2d4   :  { %v420_v40 = vpop.f32.mrf.mxu0  ;;  %v500_v41 = vpop.f32.mrf.mxu1 }
 0x2d5   :  { %1598 = vpow2.f32 %v1298_v39  ;;  %v501_v42 = vadd.f32 %v1292_v33, %v500_v41  ;;  %v421_v55 = vadd.f32 %v1286_v51, %v420_v40  ;;  %v709_v41 = vld [vmem:[#allocation2 + $0x20] sm:$0xff]  ;;  %v708_v51 = vld [vmem:[#allocation2 + $0x18] sm:$0xff] }
 0x2d6   :  { %v1440_v43 = vpop.f32.mrf.mxu0  ;;  %v1452_v44 = vpop.f32.mrf.mxu1 }
 0x2d7   :  { %v1299_v45 = vmul.f32 -1.442695, %v501_v42  ;;  %v714_v42 = vld [vmem:[#allocation5 + $0x28] sm:$0xff] }
 0x2d9   :  { %1600 = vpow2.f32 %v1299_v45  ;;  %v710_v45 = vld [vmem:[#allocation2 + $0x28] sm:$0xff] }
 0x2e2   :  { %v1599_v47 = vpop.eup %1598 }
 0x2e3   :  { %v510_v48 = vadd.f32 1.0, %v1599_v47 }
 0x2e5   :  { %1602 = vrcp.f32 %v510_v48 }
 0x2e6   :  { %v1601_v49 = vpop.eup %1600 }
 0x2e7   :  { %v511_v50 = vadd.f32 1.0, %v1601_v49 }
 0x2e9   :  { %1604 = vrcp.f32 %v511_v50 }
 0x2f2   :  { %v1603_v53 = vpop.eup %1602 }
 0x2f3   :  { %v516_v54 = vmul.f32 %v1603_v53, %v418_v52  ;;  %v712_v52 = vld [vmem:[#allocation5 + $0x18] sm:$0xff] }
 0x2f5   :  { %v518_v56 = vadd.f32 %v516_v54, %v1910_v1 }
 0x2f6   :  { %v1605_v57 = vpop.eup %1604 }
 0x2f7   :  { %1469 = vmatprep.mubr.msk.f32.mxu0 %vm379_vm3, %v518_v56  ;;  %v517_v58 = vmul.f32 %v1605_v57, %v421_v55  ;;  %v520_v60 = vmul.f32 %v518_v56, %v518_v56 }
 0x2f9   :  { %v519_v59 = vadd.f32 %v517_v58, %v1915_v2 }
 0x2fb   :  { %1470 = vmatmul.mubr.msk.f32.vlgmr.msra.gmra.mxu0 %vm379_vm3, %v519_v59  ;;  %v521_v61 = vmul.f32 %v519_v59, %v519_v59 }
 0x2fc   :  { %1472 = vmatprep.mubr.msk.f32.mxu0 %vm379_vm3, %v520_v60 }
 0x2ff   :  { %1473 = vmatmul.mubr.msk.f32.gmra.mxu0 %vm379_vm3, %v521_v61 }
 0x300   :  { %1495 = vmatprep.mubr.msk.bf16.mxu0 %vm1787_vm0, %v1786_v0 }
 0x3bb   :  { %v1471_v62 = vpop.f32.mrf.mxu0 }
 0x3bc   :  { %v620_v1 = vmul.f32 %v1471_v62, %v1471_v62  ;;  %v624_v12 = vsub.f32 %v519_v59, %v1471_v62 }
 0x3bd   :  { %v600_v63 = vpop.f32.mrf.mxu0 }
 0x3be   :  { %v619_v7 = vmul.f32 %v600_v63, %v600_v63  ;;  %v623_v15 = vsub.f32 %v518_v56, %v600_v63 }
 0x3bf   :  { %v1474_v3 = vpop.f32.mrf.mxu0 }
 0x3c0   :  { %v622_v8 = vsub.f32 %v1474_v3, %v620_v1 }
 0x3c1   :  { %v610_v9 = vpop.f32.mrf.mxu0 }
 0x3c2   :  { %v626_v10 = vadd.f32 1e-05, %v622_v8  ;;  %v621_v2 = vsub.f32 %v610_v9, %v619_v7 }
 0x3c4   :  { %1606 = vrsqrt.f32 %v626_v10  ;;  %v625_v11 = vadd.f32 1e-05, %v621_v2  ;;  %v1574_v2 = vld [vmem:[#allocation7 + $0x38] sm:$0xff]  }
 0x3c6   :  { %1608 = vrsqrt.f32 %v625_v11  ;;  %v1575_v11 = vld [vmem:[#allocation8 + $0x38] sm:$0xff]  }
 0x3d1   :  { %v1607_v13 = vpop.eup %1606 }
 0x3d2   :  { %v630_v16 = vmul.f32 %v1607_v13, %v624_v12  ;;  %v1576_v12 = vld [vmem:[#allocation7 + $0x30] sm:$0xff]  }
 0x3d3   :  { %v1609_v17 = vpop.eup %1608  ;;  %v1577_v13 = vld [vmem:[#allocation8 + $0x30] sm:$0xff]  }
 0x3d4   :  { %v629_v18 = vmul.f32 %v1609_v17, %v623_v15  ;;  %v639_v19 = vmul.f32 %v1304_v14, %v630_v16  ;;  %v1580_v15 = vld [vmem:[#allocation7 + $0x20] sm:$0xff]  }
 0x3d5   :  { %v1581_v16 = vld [vmem:[#allocation8 + $0x20] sm:$0xff]  }
 0x3d6   :  { %v638_v21 = vmul.f32 %v1304_v14, %v629_v18  ;;  %v2031_v23 = vadd.f32 %v1305_v20, %v639_v19  ;;  %v1579_v14 = vld [vmem:[#allocation8 + $0x28] sm:$0xff]   ;;  %v1310_v17 = vld [vmem:[%s2116_s5 + $0x1] ss:$0 sm:$0xff] }
 0x3d8   :  { %v2029_v22 = vadd.f32 %v1305_v20, %v638_v21 }
 0x3da   :  { %v649_v24 = vpack.c.bf16 %v2031_v23, %v2029_v22  ;;  %v744_v18 = vmul.f32 %v1310_v17, %v2029_v22 }
 0x3dc   :  { %1476 = vmatpush3.bf16.msra.mxu1 %v649_v24 }
 0x3dd   :  { %1499 = vmatprep.subr.bf16.mxu1 %v1786_v0 }
 0x3df   :  { %1478 = vmatmul.mubr.msk.bf16.vlgmr.msra.gmra.mxu1 %vm168_vm1, %v1922_v4 }
 0x3e0   :  { %1481 = vmatprep.mubr.msk.bf16.mxu1 %vm1787_vm0, %v1786_v0  ;;  %1500 = vmatpush3.bf16.msra.mxu1 %v1574_v2 }
 0x3e1   :  { %1501 = vmatprep.subr.bf16.mxu1 %v1786_v0 }
 0x3e4   :  { %1502 = vmatpush3.bf16.msra.mxu1 %v1576_v12  ;;  %v1582_v12 = vld [vmem:[#allocation11 + $0x30] ss:$8 sps:$4 sm:$0xff]  }
 0x3e5   :  { %1503 = vmatprep.subr.bf16.mxu1 %v1786_v0 }
 0x3e7   :  { %1482 = vmatmul.mubr.msk.bf16.gmra.mxu1 %vm168_vm1, %v1942_v6  ;;  %v713_v6 = vld [vmem:[#allocation5 + $0x20] sm:$0xff] }
 0x3e8   :  { %1485 = vmatprep.mubr.msk.bf16.mxu1 %vm1787_vm0, %v1786_v0 }
 0x3ef   :  { %1486 = vmatmul.mubr.msk.bf16.gmra.mxu1 %vm168_vm1, %v1927_v5 }
 0x3f0   :  { %1507 = vmatprep.mubr.msk.bf16.mxu1 %vm1787_vm0, %v1786_v0 }
 0x49f   :  { %v684_v33 = vpop.f32.mrf.mxu1 }
 0x4a0   :  { %v724_v58 = vmul.f32 %v712_v52, %v684_v33  ;;  %v715_v3 = vmul.f32 %v708_v51, %v684_v33  ;;  %v745_v33 = vmul.f32 %v1310_v17, %v2031_v23  ;;  %v1591_v17 = vld [vmem:[#allocation11] ss:$8 sps:$4 sm:$0xff]  }
 0x4a1   :  { %v1479_v34 = vpop.f32.mrf.mxu1 }
 0x4a3   :  { %v687_v35 = vpop.f32.mrf.mxu1 }
 0x4a4   :  { %v725_v5 = vmul.f32 %v713_v6, %v687_v35  ;;  %v716_v62 = vmul.f32 %v709_v41, %v687_v35 }
 0x4a5   :  { %v1480_v36 = vpop.f32.mrf.mxu1 }
 0x4a7   :  { %v692_v4 = vpop.f32.mrf.mxu1 }
 0x4a8   :  { %v726_v48 = vmul.f32 %v714_v42, %v692_v4  ;;  %v717_v54 = vmul.f32 %v710_v45, %v692_v4 }
 0x4a9   :  { %v1483_v37 = vpop.f32.mrf.mxu1 }
 0x4ab   :  { %v695_v38 = vpop.f32.mrf.mxu1 }
 0x4ac   :  { %v727_v55 = vmul.f32 %v708_v51, %v695_v38  ;;  %v718_v63 = vmul.f32 %v712_v52, %v695_v38 }
 0x4ad   :  { %v1484_v39 = vpop.f32.mrf.mxu1 }
 0x4ae   :  { %v730_v1 = vadd.f32 %v727_v55, %v724_v58  ;;  %v721_v9 = vsub.f32 %v715_v3, %v718_v63 }
 0x4af   :  { %v700_v40 = vpop.f32.mrf.mxu1 }
 0x4b0   :  { %v728_v44 = vmul.f32 %v709_v41, %v700_v40  ;;  %v719_v59 = vmul.f32 %v713_v6, %v700_v40 }
 0x4b1   :  { %v1487_v43 = vpop.f32.mrf.mxu1 }
 0x4b2   :  { %v731_v56 = vadd.f32 %v728_v44, %v725_v5  ;;  %v722_v7 = vsub.f32 %v716_v62, %v719_v59 }
 0x4b3   :  { %v703_v47 = vpop.f32.mrf.mxu1 }
 0x4b4   :  { %v720_v49 = vmul.f32 %v714_v42, %v703_v47  ;;  %v729_v50 = vmul.f32 %v710_v45, %v703_v47  ;;  %v733_v10 = vpack.c.bf16 %v722_v7, %v721_v9 }
 0x4b5   :  { %v1488_v53 = vpop.f32.mrf.mxu1 }
 0x4b6   :  { %v732_v57 = vadd.f32 %v729_v50, %v726_v48  ;;  %v723_v60 = vsub.f32 %v717_v54, %v720_v49 }
 0x4b8   :  { %v735_v61 = vpack.c.bf16 %v732_v57, %v731_v56  ;;  %v734_v8 = vpack.c.bf16 %v730_v1, %v723_v60 }
 0x4ba   :  { %1490 = vmatpush3.bf16.msra.mxu0 %v735_v61  ;;  %v1313_v61 = vld [vmem:[%s2119_s8 + $0x1] ss:$0 sm:$0xff] }
 0x4bb   :  { %1491 = vmatprep.subr.bf16.mxu0 %v1786_v0 }
 0x4be   :  { %1492 = vmatpush3.bf16.msra.mxu0 %v734_v8 }
 0x4bf   :  { %1493 = vmatprep.subr.bf16.mxu0 %v1786_v0 }
 0x4c2   :  { %1494 = vmatpush3.bf16.msra.mxu0 %v733_v10 }
 0x4c3   :  { %1511 = vmatprep.subr.bf16.mxu0 %v1786_v0 }
 0x4c5   :  { %1496 = vmatmul.mubr.msk.bf16.vlgmr.msra.gmra.mxu0 %vm276_vm2, %v1953_v46  ;;  %v1578_v46 = vld [vmem:[#allocation7 + $0x28] sm:$0xff]  }
 0x4c6   :  { %1519 = vmatprep.mubr.msk.bf16.mxu0 %vm1787_vm0, %v1786_v0  ;;  %1512 = vmatpush3.bf16.msra.mxu0 %v1575_v11 }
 0x4c7   :  { %1513 = vmatprep.subr.bf16.mxu0 %v1786_v0  ;;  %1504 = vmatpush3.bf16.msra.mxu1 %v1578_v46  ;;  %v1587_v46 = vld [vmem:[#allocation11 + $0x24] ss:$8 sps:$4 sm:$0xff]  }
 0x4c8   :  { %1505 = vmatprep.subr.bf16.mxu1 %v1786_v0 }
 0x4ca   :  { %1514 = vmatpush3.bf16.msra.mxu0 %v1577_v13  ;;  %v1584_v13 = vld [vmem:[#allocation11 + $0x34] ss:$8 sps:$4 sm:$0xff]  }
 0x4cb   :  { %1515 = vmatprep.subr.bf16.mxu0 %v1786_v0  ;;  %1506 = vmatpush3.bf16.msra.mxu1 %v1580_v15  ;;  %v1590_v15 = vld [vmem:[#allocation11 + $0x14] ss:$8 sps:$4 sm:$0xff]  }
 0x4cc   :  { %1523 = vmatprep.subr.mxu1 %v1976_v25 }
 0x4ce   :  { %1516 = vmatpush3.bf16.msra.mxu0 %v1579_v14  ;;  %v1788_v14 = vmov 0  }
 0x4cf   :  { %1517 = vmatprep.subr.bf16.mxu0 %v1786_v0 }
 0x4d2   :  { %1518 = vmatpush3.bf16.msra.mxu0 %v1581_v16  ;;  %v1593_v16 = vld [vmem:[#allocation11 + $0x4] ss:$8 sps:$4 sm:$0xff]  }
 0x4d3   :  { %1203 = vmatprep.subr.bf16.mxu0 %v1584_v13 }
 0x585   :  { %v780_v19 = vpop.f32.mrf.mxu0 }
 0x586   :  { %v781_v20 = vadd.f32 %v780_v19, %v744_v18 }
 0x587   :  { %v1497_v21 = vpop.f32.mrf.mxu0 }
 0x588   :  { %v789_v24 = vmul.f32 0.044715, %v781_v20  ;;  %v787_v47 = vmul.f32 0.5, %v781_v20 }
 0x589   :  { %v783_v34 = vpop.f32.mrf.mxu0 }
 0x58a   :  { %v791_v0 = vmul.f32 %v789_v24, %v781_v20  ;;  %v784_v35 = vadd.f32 %v783_v34, %v745_v33 }
 0x58b   :  { %v1498_v36 = vpop.f32.mrf.mxu0 }
 0x58c   :  { %v793_v4 = vmul.f32 %v791_v0, %v781_v20  ;;  %v790_v37 = vmul.f32 0.044715, %v784_v35  ;;  %v788_v5 = vmul.f32 0.5, %v784_v35 }
 0x58e   :  { %v795_v38 = vadd.f32 %v793_v4, %v781_v20  ;;  %v792_v39 = vmul.f32 %v790_v37, %v784_v35 }
 0x590   :  { %v797_v40 = vmul.f32 0.7978846, %v795_v38  ;;  %v794_v41 = vmul.f32 %v792_v39, %v784_v35  ;;  %v1333_v38 = vld [vmem:[%s2121_s10 + $0x1] ss:$0 sm:$0xff] }
 0x592   :  { %1610 = vtanh.f32 %v797_v40  ;;  %v796_v6 = vadd.f32 %v794_v41, %v784_v35 }
 0x594   :  { %v798_v42 = vmul.f32 0.7978846, %v796_v6  ;;  %v1335_v6 = vld [vmem:[%s2122_s11 + $0x1] ss:$0 sm:$0xff] }
 0x596   :  { %1612 = vtanh.f32 %v798_v42 }
 0x59f   :  { %v1611_v43 = vpop.eup %1610 }
 0x5a0   :  { %v801_v44 = vadd.f32 1.0, %v1611_v43 }
 0x5a2   :  { %v803_v49 = vmul.f32 %v801_v44, %v787_v47 }
 0x5a3   :  { %v1613_v45 = vpop.eup %1612 }
 0x5a4   :  { %v802_v48 = vadd.f32 1.0, %v1613_v45 }
 0x5a6   :  { %v804_v50 = vmul.f32 %v802_v48, %v788_v5 }
 0x5a8   :  { %v805_v51 = vpack.c.bf16 %v804_v50, %v803_v49 }
 0x5aa   :  { %1508 = vmatmul.mubr.msk.bf16.vlgmr.msra.gmra.mxu1 %vm379_vm3, %v805_v51  ;;  %1520 = vmatmul.mubr.msk.bf16.vlgmr.msra.gmra.mxu0 %vm379_vm3, %v805_v51 }
 0x5ab   :  { %1524 = vmatpush3.msra.mxu1 %v1976_v25  ;;  %v1320_v25 = vld [vmem:[%s2120_s9 + $0x1] ss:$0 sm:$0xff]  ;;  %1204 = vmatpush1.bf16.msra.mxu0 %v1582_v12 }
 0x5ac   :  { %1525 = vmatprep.subr.mxu1 %v1978_v26  ;;  %1227 = vmatprep.mubr.bf16.mxu0 %v1788_v14 }
 0x5ad   :  { %1526 = vmatpush3.msra.mxu1 %v1978_v26  ;;  %1205 = vmatprep.subr.bf16.mxu0 %v1587_v46 }
 0x5ae   :  { %1527 = vmatprep.subr.mxu1 %v1982_v27 }
 0x5af   :  { %1528 = vmatpush3.msra.mxu1 %v1982_v27 }
 0x5b0   :  { %1529 = vmatprep.subr.mxu1 %v1986_v28 }
 0x5b1   :  { %1530 = vmatpush3.msra.mxu1 %v1986_v28 }
 0x5b2   :  { %1531 = vmatprep.subr.mxu1 %v1990_v29 }
 0x5b3   :  { %1532 = vmatpush3.msra.mxu1 %v1990_v29 }
 0x5b4   :  { %1533 = vmatprep.subr.mxu1 %v1994_v30 }
 0x5b5   :  { %1534 = vmatpush3.msra.mxu1 %v1994_v30 }
 0x5b6   :  { %1535 = vmatprep.subr.mxu1 %v1998_v31 }
 0x5b7   :  { %1536 = vmatpush3.msra.mxu1 %v1998_v31 }
 0x5b8   :  { %1537 = vmatprep.subr.mxu1 %v2004_v32 }
 0x5b9   :  { %1538 = vmatpush3.msra.mxu1 %v2004_v32 }
 0x66a   :  { %v884_v26 = vpop.f32.mrf.mxu1  ;;  %v966_v27 = vpop.f32.mrf.mxu0 }
 0x66b   :  { %v967_v28 = vadd.f32 %v1320_v25, %v966_v27  ;;  %v885_v62 = vadd.f32 %v1313_v61, %v884_v26 }
 0x66c   :  { %v1509_v29 = vpop.f32.mrf.mxu1  ;;  %v1521_v52 = vpop.f32.mrf.mxu0 }
 0x66d   :  { %v1326_v53 = vmul.f32 -1.442695, %v967_v28 }
 0x66e   :  { %v887_v54 = vpop.f32.mrf.mxu1  ;;  %v969_v30 = vpop.f32.mrf.mxu0 }
 0x66f   :  { %1614 = vpow2.f32 %v1326_v53  ;;  %v970_v55 = vadd.f32 %v1320_v25, %v969_v30  ;;  %v888_v3 = vadd.f32 %v1313_v61, %v887_v54  ;;  %v1182_v53 = vlaneseq }
 0x670   :  { %v1510_v56 = vpop.f32.mrf.mxu1  ;;  %v1522_v31 = vpop.f32.mrf.mxu0 }
 0x671   :  { %v1327_v57 = vmul.f32 -1.442695, %v970_v55  ;;  %v1183_v54 = vshrl.u32 %v1182_v53, 7  ;;  %v1789_v56 = vmov 1966171168   ;;  %vm1256_vm4 = vcmp.lt.s32.totalorder %v1182_v53, 256 }
 0x672   :  { %v1240_v31 = vunpack.c.l.s4 %v1789_v56 }
 0x673   :  { %1616 = vpow2.f32 %v1327_v57  ;;  %v1184_v30 = vsub.s32 0, %v1183_v54  ;;  %v1188_v55 = vsub.s32 1, %v1183_v54  ;;  %v1140_v57 = vld [vmem:[%s2125_s14] sm:$0x3] }
 0x67c   :  { %v1615_v58 = vpop.eup %1614 }
 0x67d   :  { %v979_v32 = vadd.f32 1.0, %v1615_v58  ;;  %v1185_v58 = vrot.slane %v1140_v57, %v1184_v30 }
 0x67f   :  { %1618 = vrcp.f32 %v979_v32  ;;  %v1189_v32 = vrot.slane %v1140_v57, %v1188_v55 }
 0x680   :  { %v1617_v59 = vpop.eup %1616 }
 0x681   :  { %v980_v60 = vadd.f32 1.0, %v1617_v59  ;;  %v1241_v59 = vunpack.c.0.s8 %v1240_v31 }
 0x683   :  { %1620 = vrcp.f32 %v980_v60 }
 0x68c   :  { %v1619_v63 = vpop.eup %1618 }
 0x68d   :  { %v985_v1 = vmul.f32 %v1619_v63, %v885_v62 }
 0x68f   :  { %v987_v7 = vadd.f32 %v985_v1, %v2029_v22  ;;  %v1585_v22 = vld [vmem:[#allocation11 + $0x20] ss:$8 sps:$4 sm:$0xff]   ;;  %v1244_v1 = vsub.s32 %v1241_v59, %v1183_v54 }
 0x690   :  { %v1621_v8 = vpop.eup %1620  ;;  %1206 = vmatpush1.bf16.msra.mxu0 %v1585_v22 }
 0x691   :  { %1539 = vmatprep.mubr.msk.f32.mxu1 %vm379_vm3, %v987_v7  ;;  %v986_v9 = vmul.f32 %v1621_v8, %v888_v3  ;;  %v989_v2 = vmul.f32 %v987_v7, %v987_v7  ;;  %1207 = vmatprep.subr.bf16.mxu0 %v1590_v15 }
 0x693   :  { %v988_v10 = vadd.f32 %v986_v9, %v2031_v23  ;;  %v1588_v23 = vld [vmem:[#allocation11 + $0x10] ss:$8 sps:$4 sm:$0xff]  }
 0x694   :  { %1208 = vmatpush1.bf16.msra.mxu0 %v1588_v23 }
 0x695   :  { %1540 = vmatmul.mubr.msk.f32.vlgmr.msra.gmra.mxu1 %vm379_vm3, %v988_v10  ;;  %v990_v11 = vmul.f32 %v988_v10, %v988_v10  ;;  %1209 = vmatprep.subr.bf16.mxu0 %v1593_v16 }
 0x696   :  { %1542 = vmatprep.mubr.msk.f32.mxu1 %vm379_vm3, %v989_v2 }
 0x698   :  { %1210 = vmatpush1.bf16.msra.mxu0 %v1591_v17 }
 0x699   :  { %1543 = vmatmul.mubr.msk.f32.gmra.mxu1 %vm379_vm3, %v990_v11 }
 0x755   :  { %v1541_v18 = vpop.f32.mrf.mxu1 }
 0x756   :  { %v1089_v20 = vmul.f32 %v1541_v18, %v1541_v18  ;;  %v1093_v4 = vsub.f32 %v988_v10, %v1541_v18 }
 0x757   :  { %v1069_v19 = vpop.f32.mrf.mxu1 }
 0x758   :  { %v1088_v24 = vmul.f32 %v1069_v19, %v1069_v19  ;;  %v1092_v39 = vsub.f32 %v987_v7, %v1069_v19 }
 0x759   :  { %v1544_v21 = vpop.f32.mrf.mxu1 }
 0x75a   :  { %v1091_v33 = vsub.f32 %v1544_v21, %v1089_v20 }
 0x75b   :  { %v1079_v34 = vpop.f32.mrf.mxu1 }
 0x75c   :  { %v1095_v0 = vadd.f32 1e-05, %v1091_v33  ;;  %v1090_v35 = vsub.f32 %v1079_v34, %v1088_v24 }
 0x75e   :  { %1622 = vrsqrt.f32 %v1095_v0  ;;  %v1094_v36 = vadd.f32 1e-05, %v1090_v35 }
 0x760   :  { %1624 = vrsqrt.f32 %v1094_v36 }
 0x76b   :  { %v1623_v37 = vpop.eup %1622 }
 0x76c   :  { %v1099_v40 = vmul.f32 %v1623_v37, %v1093_v4 }
 0x76d   :  { %v1625_v41 = vpop.eup %1624 }
 0x76e   :  { %v1109_v42 = vmul.f32 %v1333_v38, %v1099_v40  ;;  %v1098_v43 = vmul.f32 %v1625_v41, %v1092_v39 }
 0x770   :  { %v1119_v44 = vadd.f32 %v1335_v6, %v1109_v42  ;;  %v1108_v45 = vmul.f32 %v1333_v38, %v1098_v43 }
 0x772   :  { %v1118_v47 = vadd.f32 %v1335_v6, %v1108_v45  ;;  %v1121_v48 = vsel %vm379_vm3, %v1119_v44, 0.0 }
 0x774   :  { %v1120_v5 = vsel %vm379_vm3, %v1118_v47, 0.0 }
 0x775   :  { %v1122_v49 = vadd.f32 %v1121_v48, %v1120_v5 }
 0x777   :  { %v1123_v50 = vrot.slane %v1122_v49, 4 }
 0x779   :  { %v1124_v51 = vadd.f32 %v1123_v50, %v1122_v49 }
 0x77b   :  { %v1125_v25 = vrot.slane %v1124_v51, 2 }
 0x77d   :  { %v1126_v26 = vadd.f32 %v1125_v25, %v1124_v51 }
 0x77f   :  { %v1127_v27 = vrot.slane %v1126_v26, 1 }
 0x781   :  { %v1128_v28 = vadd.f32 %v1127_v27, %v1126_v26 }
 0x783   :  { %v1130_v29 = vmul.f32 0.0625, %v1128_v28 }
 0x785   :  { %v1131_v52 = vpack.c.bf16 %v1130_v29, %v1130_v29 }
 0x787   :  { %1344 = vmatmul.mubr.msk.bf16.vlgmr.msra.gmra.mxu0 %vm379_vm3, %v1131_v52 }
 0x847   :  { %v1229_v60 = vpop.f32.mrf.mxu0 }
 0x848   :  { %v1230_v62 = vadd.f32 %v1229_v60, %v1185_v58 }
 0x849   :  { %v1231_v61 = vpop.f32.mrf.mxu0 }
 0x84a   :  { %v1232_v63 = vadd.f32 %v1231_v61, %v1189_v32 }
 0x84b   :  { %v1233_v3 = vpop.f32.mrf.mxu0 }
 0x84c   :  { %v1238_v7 = vcombine.low %v1230_v62, %v1232_v63 }
 0x84d   :  { %v1234_v8 = vpop.f32.mrf.mxu0 }
 0x84e   :  { %v1245_v9 = vrot.slane %v1238_v7, %v1244_v1 }
 0x850   :  { %v1252_v10 = vrot.slane %v1245_v9, %v1244_v1 }
 0x852   :  { %1258 = vst.msk [vmem:[#allocation13] sm:$0x3] %vm1256_vm4, %v1252_v10 }
 0x853   :  { %1757 = shalt.err (!%p1754_p6)
}
 0x854   :  { %1268 = dma.vmem_to_hbm [thread:$0]  %s1266_s23, 32, %s2126_s15, [#allocation4]  }
 0x855   :  { %1774 = dma.done.wait [#allocation4], 32  }
 0x856   :  { %1775 = vsyncadd [#allocation4], 4294967264 }
 0x857   :  { %1272 = vsyncpa [#allocation3], 1 }
 0x858   :  { %1273 = vsyncpa [#allocation6], 1 }
 0x859   :  { %1274 = vsyncpa [#allocation9], 1 }
 0x85a   :  { %1275 = vsyncpa [#allocation12], 1 }
 0x85b   :  { %1276 = vsyncpa [#allocation4], 1 }

// kernel: tpu_custom_call.1
= control target key start
LH: loop header
LB: loop body
LE: loop exit
PB: predicated region body
PF: predicated region fallthrough
CT: control target
= control target key end

     0   :  { %20 = vsyncpa [#allocation3], 0  ;;  %s2111_s0 = inlined_call_operand.vmem [shape: f32[1,16,64], index: 0, kind: input, shape index: {}]   ;;  %s2112_s1 = inlined_call_operand.vmem [shape: bf16[48,16], index: 1, kind: input, shape index: {}]   ;;  %s2113_s2 = inlined_call_operand.vmem [shape: bf16[16,48], index: 2, kind: input, shape index: {}]   ;;  %s2114_s3 = inlined_call_operand.hbm [shape: f32[2,24,64], index: 3, kind: input, shape index: {}]   ;;  %s2115_s4 = inlined_call_operand.hbm [shape: f32[2,24,64], index: 4, kind: input, shape index: {}]   ;;  %s2116_s5 = inlined_call_operand.vmem [shape: f32[2,1,64], index: 5, kind: input, shape index: {}]   ;;  %s2117_s6 = inlined_call_operand.hbm [shape: bf16[2,64,64], index: 6, kind: input, shape index: {}]   ;;  %s2118_s7 = inlined_call_operand.hbm [shape: bf16[2,64,64], index: 7, kind: input, shape index: {}]   ;;  %s2119_s8 = inlined_call_operand.vmem [shape: f32[2,1,64], index: 8, kind: input, shape index: {}]   ;;  %s2120_s9 = inlined_call_operand.vmem [shape: f32[2,1,64], index: 9, kind: input, shape index: {}]   ;;  %s2121_s10 = inlined_call_operand.vmem [shape: f32[2,1,64], index: 10, kind: input, shape index: {}]   ;;  %s2122_s11 = inlined_call_operand.vmem [shape: f32[2,1,64], index: 11, kind: input, shape index: {}]   ;;  %s2123_s12 = inlined_call_operand.hbm [shape: f32[64,64], index: 12, kind: input, shape index: {}]   ;;  %s2124_s13 = inlined_call_operand.hbm [shape: bf16[64,256], index: 13, kind: input, shape index: {}]   ;;  %s2125_s14 = inlined_call_operand.vmem [shape: f32[1,256], index: 14, kind: input, shape index: {}]   ;;  %s2126_s15 = inlined_call_operand.hbm [shape: f32[1,1,256], index: 15, kind: output, shape index: {}]  }
   0x1   :  { %21 = vsyncpa [#allocation6], 0 }
   0x2   :  { %22 = vsyncpa [#allocation9], 0 }
   0x3   :  { %23 = vsyncpa [#allocation12], 0 }
   0x4   :  { %24 = vsyncpa [#allocation4], 0  ;;  %s1776_s18 = smov [#allocation5]  }
   0x5   :  { %s48_s19 = sshll.u32 %s1776_s18, 4  ;;  %s49_s19 = int_to_ptr.vmem [resolvable:$true] %s48_s19 }
   0x6   :  { %s1634_s20 = scalar_lea.vmem %s49_s19, 768  ;;  %p1639_p1 = scmp.lt.s32.totalorder %s49_s19, %s49_s19 }
   0x7   :  { %p1635_p0 = scmp.ne.s32.totalorder %s49_s19, %s1634_s20  ;;  %p1640_p2 = scmp.lt.s32.totalorder %s1634_s20, %s1634_s20 }
   0x9   :  { %p1641_p3 = por %p1640_p2, %p1639_p1 }
   0xb   :  { %p1642_p4 = pnand %p1641_p3, %p1635_p0 }
   0xd   :  { %1645 = shalt.err (!%p1642_p4)
}
   0xe   :  { %s1777_s21 = smov 128   ;;  %s1778_s22 = smov 8  }
   0xf   :  { %54 = dma.hbm_to_vmem [thread:$0]  %s2115_s4, 768, %s49_s19, [#allocation6], %s1777_s21, %s1777_s21, %s1778_s22  }
  0x10   :  { %s1779_s25 = smov [#allocation8]   ;;  %s1780_s27 = smov [#allocation2]  }
  0x11   :  { %s74_s26 = sshll.u32 %s1779_s25, 4  ;;  %s36_s28 = sshll.u32 %s1780_s27, 4  ;;  %s75_s26 = int_to_ptr.vmem [resolvable:$true] %s74_s26  ;;  %s37_s28 = int_to_ptr.vmem [resolvable:$true] %s36_s28 }
  0x12   :  { %s1654_s29 = scalar_lea.vmem %s75_s26, 1024  ;;  %p1659_p6 = scmp.lt.s32.totalorder %s75_s26, %s75_s26 }
  0x13   :  { %p1655_p5 = scmp.ne.s32.totalorder %s75_s26, %s1654_s29  ;;  %p1660_p7 = scmp.lt.s32.totalorder %s1654_s29, %s1654_s29 }
  0x15   :  { %p1661_p8 = por %p1660_p7, %p1659_p6 }
  0x17   :  { %p1662_p9 = pnand %p1661_p8, %p1655_p5 }
  0x19   :  { %1665 = shalt.err (!%p1662_p9)
}
  0x1a   :  { %s1781_s30 = smov 64   ;;  %s1782_s16 = smov 4  }
  0x1b   :  { %80 = dma.hbm_to_vmem [thread:$0]  %s2118_s7, 1024, %s75_s26, [#allocation9], %s1781_s30, %s1781_s30, %s1782_s16  }
  0x1c   :  { %s1674_s4 = scalar_lea.vmem %s37_s28, 768  ;;  %p1679_p11 = scmp.lt.s32.totalorder %s37_s28, %s37_s28 }
  0x1d   :  { %p1675_p10 = scmp.ne.s32.totalorder %s37_s28, %s1674_s4  ;;  %p1680_p12 = scmp.lt.s32.totalorder %s1674_s4, %s1674_s4 }
  0x1f   :  { %p1681_p13 = por %p1680_p12, %p1679_p11 }
  0x21   :  { %p1682_p0 = pnand %p1681_p13, %p1675_p10 }
  0x23   :  { %1685 = shalt.err (!%p1682_p0)
}
  0x24   :  { %42 = dma.hbm_to_vmem [thread:$0]  %s2114_s3, 768, %s37_s28, [#allocation3], %s1777_s21, %s1777_s21, %s1778_s22  }
  0x25   :  { %s1783_s23 = smov [#allocation7]   ;;  %s1784_s25 = smov [#allocation10]  }
  0x26   :  { %s62_s24 = sshll.u32 %s1783_s23, 4  ;;  %s94_s7 = sshll.u32 %s1784_s25, 4  ;;  %s63_s24 = int_to_ptr.vmem [resolvable:$true] %s62_s24  ;;  %s95_s7 = int_to_ptr.vmem [resolvable:$true] %s94_s7 }
  0x27   :  { %s1694_s26 = scalar_lea.vmem %s63_s24, 1024  ;;  %p1699_p2 = scmp.lt.s32.totalorder %s63_s24, %s63_s24 }
  0x28   :  { %p1695_p1 = scmp.ne.s32.totalorder %s63_s24, %s1694_s26  ;;  %p1700_p3 = scmp.lt.s32.totalorder %s1694_s26, %s1694_s26 }
  0x2a   :  { %p1701_p4 = por %p1700_p3, %p1699_p2 }
  0x2c   :  { %p1702_p5 = pnand %p1701_p4, %p1695_p1 }
  0x2e   :  { %1705 = shalt.err (!%p1702_p5)
}
  0x2f   :  { %68 = dma.hbm_to_vmem [thread:$0]  %s2117_s6, 1024, %s63_s24, [#allocation6], %s1781_s30, %s1781_s30, %s1782_s16  }
  0x30   :  { %s1714_s17 = scalar_lea.vmem %s95_s7, 1024  ;;  %p1719_p7 = scmp.lt.s32.totalorder %s95_s7, %s95_s7 }
  0x31   :  { %p1715_p6 = scmp.ne.s32.totalorder %s95_s7, %s1714_s17  ;;  %p1720_p8 = scmp.lt.s32.totalorder %s1714_s17, %s1714_s17 }
  0x33   :  { %p1721_p9 = por %p1720_p8, %p1719_p7 }
  0x35   :  { %p1722_p10 = pnand %p1721_p9, %p1715_p6 }
  0x37   :  { %1725 = shalt.err (!%p1722_p10)
}
  0x38   :  { %100 = dma.hbm_to_vmem [thread:$0]  %s2123_s12, 1024, %s95_s7, [#allocation9], %s1777_s21, %s1777_s21, %s1778_s22  }
  0x39   :  { %s1785_s18 = smov [#allocation11]  }
  0x3a   :  { %s106_s4 = sshll.u32 %s1785_s18, 4  ;;  %s107_s4 = int_to_ptr.vmem [resolvable:$true] %s106_s4 }
  0x3b   :  { %s1734_s19 = scalar_lea.vmem %s107_s4, 1024  ;;  %p1739_p12 = scmp.lt.s32.totalorder %s107_s4, %s107_s4 }
  0x3c   :  { %p1735_p11 = scmp.ne.s32.totalorder %s107_s4, %s1734_s19  ;;  %p1740_p13 = scmp.lt.s32.totalorder %s1734_s19, %s1734_s19 }
  0x3e   :  { %p1741_p0 = por %p1740_p13, %p1739_p12 }
  0x40   :  { %p1742_p1 = pnand %p1741_p0, %p1735_p11 }
  0x42   :  { %1745 = shalt.err (!%p1742_p1)
}
  0x43   :  { %112 = dma.hbm_to_vmem [thread:$0]  %s2124_s13, 1024, %s107_s4, [#allocation12], %s1777_s21, %s1777_s21, %s1778_s22  }
  0x44   :  { %1766 = dma.done.wait [#allocation3], 768  }
  0x45   :  { %1767 = vsyncadd [#allocation3], 4294966528 }
  0x46   :  { %1768 = dma.done.wait [#allocation6], 1792  }
  0x47   :  { %1769 = vsyncadd [#allocation6], 4294965504 }
  0x48   :  { %1770 = dma.done.wait [#allocation9], 2048  }
  0x49   :  { %1771 = vsyncadd [#allocation9], 4294965248 }
  0x4a   :  { %1772 = dma.done.wait [#allocation12], 1024  }
  0x4b   :  { %1773 = vsyncadd [#allocation12], 4294966272  ;;  %v1786_v0 = vmov 0.0   ;;  %vm1787_vm0 = vmmov 0   ;;  %v1910_v1 = vld [vmem:[%s2111_s0] sm:$0xff]  ;;  %v1915_v2 = vld [vmem:[%s2111_s0 + $0x8] sm:$0xff] }
  0x4c   :  { %1405 = vmatprep.subr.bf16.mxu0 %v1786_v0  ;;  %1545 = vmatprep.subr.bf16.mxu1 %v1786_v0  ;;  %v152_v3 = vpack.c.bf16 %v1915_v2, %v1910_v1  ;;  %v1922_v4 = vld [vmem:[%s2112_s1] sm:$0xff]   ;;  %v1927_v5 = vld [vmem:[%s2112_s1 + $0x10] sm:$0xff]   ;;  %vm168_vm1 = vcmask 130048   ;;  %v1942_v6 = vld [vmem:[%s2112_s1 + $0x8] sm:$0xff]   ;;  %vm276_vm2 = vcmask 392192   ;;  %vm379_vm3 = vcmask 523264  }
  0x4d   :  { %1407 = vmatprep.mubr.msk.bf16.mxu0 %vm1787_vm0, %v1786_v0  ;;  %1415 = vmatprep.mubr.msk.bf16.mxu1 %vm1787_vm0, %v1786_v0  ;;  %v236_v11 = vld [vmem:[#allocation2 + $0x8] sm:$0xff]  ;;  %v239_v12 = vld [vmem:[#allocation5 + $0x8] sm:$0xff]  ;;  %v237_v15 = vld [vmem:[#allocation2 + $0x10] sm:$0xff]  ;;  %s1790_s20 = smov [#allocation13]  }
  0x4e   :  { %1406 = vmatpush3.bf16.msra.mxu0 %v152_v3  ;;  %1546 = vmatpush3.bf16.msra.mxu1 %v152_v3  ;;  %v240_v20 = vld [vmem:[#allocation5 + $0x10] sm:$0xff]  ;;  %v238_v22 = vld [vmem:[#allocation5] sm:$0xff]  ;;  %v1566_v47 = vld [vmem:[#allocation7 + $0x18] sm:$0xff]   ;;  %s1265_s23 = sshll.u32 %s1790_s20, 4  ;;  %s1266_s23 = int_to_ptr.vmem [resolvable:$true] %s1265_s23 }
  0x4f   :  { %1419 = vmatprep.subr.bf16.mxu1 %v1786_v0  ;;  %1429 = vmatprep.subr.bf16.mxu0 %v1786_v0  ;;  %v235_v26 = vld [vmem:[#allocation2] sm:$0xff]  ;;  %v1567_v48 = vld [vmem:[#allocation8 + $0x18] sm:$0xff]   ;;  %v1568_v49 = vld [vmem:[#allocation7 + $0x10] sm:$0xff]   ;;  %s1746_s24 = scalar_lea.vmem %s1266_s23, 32  ;;  %p1751_p3 = scmp.lt.s32.totalorder %s1266_s23, %s1266_s23 }
  0x50   :  { %v1953_v46 = vld [vmem:[%s2113_s2] sm:$0xff]   ;;  %v1569_v50 = vld [vmem:[#allocation8 + $0x10] sm:$0xff]   ;;  %v1570_v51 = vld [vmem:[#allocation7 + $0x8] sm:$0xff]   ;;  %p1747_p2 = scmp.ne.s32.totalorder %s1266_s23, %s1746_s24  ;;  %p1752_p4 = scmp.lt.s32.totalorder %s1746_s24, %s1746_s24 }
  0x51   :  { %1408 = vmatmul.mubr.msk.bf16.vlgmr.msra.gmra.mxu0 %vm168_vm1, %v1922_v4  ;;  %1416 = vmatmul.mubr.msk.bf16.vlgmr.msra.gmra.mxu1 %vm168_vm1, %v1927_v5  ;;  %v1571_v52 = vld [vmem:[#allocation8 + $0x8] sm:$0xff]   ;;  %v1572_v53 = vld [vmem:[#allocation7] sm:$0xff]  }
  0x52   :  { %1411 = vmatprep.mubr.msk.bf16.mxu0 %vm1787_vm0, %v1786_v0  ;;  %1425 = vmatprep.mubr.msk.bf16.mxu1 %vm1787_vm0, %v1786_v0  ;;  %v1573_v54 = vld [vmem:[#allocation8] sm:$0xff]   ;;  %p1753_p5 = por %p1752_p4, %p1751_p3 }
  0x53   :  { %1430 = vmatpush3.bf16.msra.mxu0 %v1566_v47  ;;  %v1283_v55 = vld [vmem:[%s2116_s5] ss:$0 sm:$0xff] }
  0x54   :  { %1431 = vmatprep.subr.bf16.mxu0 %v1786_v0  ;;  %v269_v56 = vmul.f32 %v1283_v55, %v1910_v1  ;;  %v270_v59 = vmul.f32 %v1283_v55, %v1915_v2  ;;  %p1754_p6 = pnand %p1753_p5, %p1747_p2 }
  0x57   :  { %1432 = vmatpush3.bf16.msra.mxu0 %v1568_v49 }
  0x58   :  { %1433 = vmatprep.subr.bf16.mxu0 %v1786_v0 }
  0x59   :  { %1412 = vmatmul.mubr.msk.bf16.gmra.mxu0 %vm168_vm1, %v1942_v6 }
  0x5a   :  { %1437 = vmatprep.mubr.msk.bf16.mxu0 %vm1787_vm0, %v1786_v0 }
  0x5b   :  { %1434 = vmatpush3.bf16.msra.mxu0 %v1570_v51  ;;  %v1286_v51 = vld [vmem:[%s2119_s8] ss:$0 sm:$0xff] }
  0x5c   :  { %1435 = vmatprep.subr.bf16.mxu0 %v1786_v0 }
  0x5f   :  { %1436 = vmatpush3.bf16.msra.mxu0 %v1572_v53 }
 0x111   :  { %v212_v7 = vpop.f32.mrf.mxu0  ;;  %v228_v8 = vpop.f32.mrf.mxu1 }
 0x112   :  { %v254_v18 = vmul.f32 %v236_v11, %v228_v8  ;;  %v250_v30 = vmul.f32 %v238_v22, %v212_v7  ;;  %v241_v36 = vmul.f32 %v235_v26, %v212_v7  ;;  %v245_v38 = vmul.f32 %v239_v12, %v228_v8 }
 0x113   :  { %v1409_v9 = vpop.f32.mrf.mxu0  ;;  %v1417_v10 = vpop.f32.mrf.mxu1 }
 0x115   :  { %v215_v13 = vpop.f32.mrf.mxu0  ;;  %v231_v14 = vpop.f32.mrf.mxu1 }
 0x116   :  { %v251_v19 = vmul.f32 %v239_v12, %v215_v13  ;;  %v255_v23 = vmul.f32 %v237_v15, %v231_v14  ;;  %v246_v32 = vmul.f32 %v240_v20, %v231_v14  ;;  %v242_v39 = vmul.f32 %v236_v11, %v215_v13 }
 0x117   :  { %v1410_v16 = vpop.f32.mrf.mxu0  ;;  %v1418_v17 = vpop.f32.mrf.mxu1 }
 0x118   :  { %v257_v27 = vadd.f32 %v254_v18, %v251_v19  ;;  %v248_v44 = vsub.f32 %v242_v39, %v245_v38 }
 0x119   :  { %v220_v21 = vpop.f32.mrf.mxu0 }
 0x11a   :  { %v252_v24 = vmul.f32 %v240_v20, %v220_v21  ;;  %v243_v28 = vmul.f32 %v237_v15, %v220_v21 }
 0x11b   :  { %v1413_v25 = vpop.f32.mrf.mxu0 }
 0x11c   :  { %v258_v29 = vadd.f32 %v255_v23, %v252_v24  ;;  %v249_v40 = vsub.f32 %v243_v28, %v246_v32  ;;  %v1976_v25 = vld [vmem:[#allocation10 + $0x38] sm:$0xff]  ;;  %v1986_v28 = vld [vmem:[#allocation10 + $0x20] sm:$0xff] }
 0x11d   :  { %v223_v31 = vpop.f32.mrf.mxu0  ;;  %1453 = vmatprep.subr.mxu0 %v1976_v25  ;;  %v2004_v32 = vld [vmem:[#allocation10] sm:$0xff] }
 0x11e   :  { %v261_v33 = vpack.c.bf16 %v258_v29, %v257_v27  ;;  %v244_v34 = vmul.f32 %v238_v22, %v223_v31  ;;  %v253_v35 = vmul.f32 %v235_v26, %v223_v31  ;;  %v1978_v26 = vld [vmem:[#allocation10 + $0x30] sm:$0xff]  ;;  %v1982_v27 = vld [vmem:[#allocation10 + $0x28] sm:$0xff]  ;;  %v1990_v29 = vld [vmem:[#allocation10 + $0x18] sm:$0xff] }
 0x11f   :  { %v1414_v37 = vpop.f32.mrf.mxu0  ;;  %v1998_v31 = vld [vmem:[#allocation10 + $0x8] sm:$0xff] }
 0x120   :  { %v256_v41 = vadd.f32 %v253_v35, %v250_v30  ;;  %1420 = vmatpush3.bf16.msra.mxu1 %v261_v33  ;;  %v247_v42 = vsub.f32 %v241_v36, %v244_v34  ;;  %v1994_v30 = vld [vmem:[#allocation10 + $0x10] sm:$0xff]  ;;  %v1292_v33 = vld [vmem:[%s2120_s9] ss:$0 sm:$0xff] }
 0x121   :  { %1421 = vmatprep.subr.bf16.mxu1 %v1786_v0 }
 0x122   :  { %v260_v43 = vpack.c.bf16 %v256_v41, %v249_v40  ;;  %v259_v45 = vpack.c.bf16 %v248_v44, %v247_v42 }
 0x124   :  { %1422 = vmatpush3.bf16.msra.mxu1 %v260_v43 }
 0x125   :  { %1423 = vmatprep.subr.bf16.mxu1 %v1786_v0 }
 0x128   :  { %1424 = vmatpush3.bf16.msra.mxu1 %v259_v45 }
 0x129   :  { %1441 = vmatprep.subr.bf16.mxu1 %v1786_v0 }
 0x12b   :  { %1426 = vmatmul.mubr.msk.bf16.vlgmr.msra.gmra.mxu1 %vm276_vm2, %v1953_v46 }
 0x12c   :  { %1449 = vmatprep.mubr.msk.bf16.mxu1 %vm1787_vm0, %v1786_v0  ;;  %1442 = vmatpush3.bf16.msra.mxu1 %v1567_v48 }
 0x12d   :  { %1443 = vmatprep.subr.bf16.mxu1 %v1786_v0 }
 0x130   :  { %1444 = vmatpush3.bf16.msra.mxu1 %v1569_v50 }
 0x131   :  { %1445 = vmatprep.subr.bf16.mxu1 %v1786_v0 }
 0x134   :  { %1446 = vmatpush3.bf16.msra.mxu1 %v1571_v52 }
 0x135   :  { %1447 = vmatprep.subr.bf16.mxu1 %v1786_v0 }
 0x138   :  { %1448 = vmatpush3.bf16.msra.mxu1 %v1573_v54 }
 0x139   :  { %1475 = vmatprep.subr.bf16.mxu1 %v1786_v0 }
 0x1eb   :  { %v314_v57 = vpop.f32.mrf.mxu1 }
 0x1ec   :  { %v315_v58 = vadd.f32 %v314_v57, %v269_v56 }
 0x1ed   :  { %v1427_v60 = vpop.f32.mrf.mxu1 }
 0x1ee   :  { %v323_v61 = vmul.f32 0.044715, %v315_v58  ;;  %v321_v19 = vmul.f32 0.5, %v315_v58 }
 0x1ef   :  { %v317_v62 = vpop.f32.mrf.mxu1 }
 0x1f0   :  { %v325_v63 = vmul.f32 %v323_v61, %v315_v58  ;;  %v318_v3 = vadd.f32 %v317_v62, %v270_v59 }
 0x1f1   :  { %v1428_v7 = vpop.f32.mrf.mxu1 }
 0x1f2   :  { %v327_v8 = vmul.f32 %v325_v63, %v315_v58  ;;  %v324_v9 = vmul.f32 0.044715, %v318_v3  ;;  %v322_v20 = vmul.f32 0.5, %v318_v3 }
 0x1f4   :  { %v329_v10 = vadd.f32 %v327_v8, %v315_v58  ;;  %v326_v11 = vmul.f32 %v324_v9, %v318_v3 }
 0x1f6   :  { %v331_v12 = vmul.f32 0.7978846, %v329_v10  ;;  %v328_v13 = vmul.f32 %v326_v11, %v318_v3 }
 0x1f8   :  { %1594 = vtanh.f32 %v331_v12  ;;  %v330_v14 = vadd.f32 %v328_v13, %v318_v3 }
 0x1fa   :  { %v332_v15 = vmul.f32 0.7978846, %v330_v14  ;;  %v1304_v14 = vld [vmem:[%s2121_s10] ss:$0 sm:$0xff] }
 0x1fc   :  { %1596 = vtanh.f32 %v332_v15 }
 0x205   :  { %v1595_v16 = vpop.eup %1594 }
 0x206   :  { %v335_v17 = vadd.f32 1.0, %v1595_v16 }
 0x208   :  { %v337_v22 = vmul.f32 %v335_v17, %v321_v19 }
 0x209   :  { %v1597_v18 = vpop.eup %1596 }
 0x20a   :  { %v336_v21 = vadd.f32 1.0, %v1597_v18 }
 0x20c   :  { %v338_v23 = vmul.f32 %v336_v21, %v322_v20  ;;  %v1305_v20 = vld [vmem:[%s2122_s11] ss:$0 sm:$0xff] }
 0x20e   :  { %v339_v24 = vpack.c.bf16 %v338_v23, %v337_v22 }
 0x210   :  { %1438 = vmatmul.mubr.msk.bf16.vlgmr.msra.gmra.mxu0 %vm379_vm3, %v339_v24  ;;  %1450 = vmatmul.mubr.msk.bf16.vlgmr.msra.gmra.mxu1 %vm379_vm3, %v339_v24 }
 0x211   :  { %1477 = vmatprep.mubr.msk.bf16.mxu1 %vm1787_vm0, %v1786_v0  ;;  %1454 = vmatpush3.msra.mxu0 %v1976_v25 }
 0x212   :  { %1455 = vmatprep.subr.mxu0 %v1978_v26 }
 0x213   :  { %1456 = vmatpush3.msra.mxu0 %v1978_v26 }
 0x214   :  { %1457 = vmatprep.subr.mxu0 %v1982_v27 }
 0x215   :  { %1458 = vmatpush3.msra.mxu0 %v1982_v27 }
 0x216   :  { %1459 = vmatprep.subr.mxu0 %v1986_v28 }
 0x217   :  { %1460 = vmatpush3.msra.mxu0 %v1986_v28 }
 0x218   :  { %1461 = vmatprep.subr.mxu0 %v1990_v29 }
 0x219   :  { %1462 = vmatpush3.msra.mxu0 %v1990_v29 }
 0x21a   :  { %1463 = vmatprep.subr.mxu0 %v1994_v30 }
 0x21b   :  { %1464 = vmatpush3.msra.mxu0 %v1994_v30 }
 0x21c   :  { %1465 = vmatprep.subr.mxu0 %v1998_v31 }
 0x21d   :  { %1466 = vmatpush3.msra.mxu0 %v1998_v31 }
 0x21e   :  { %1467 = vmatprep.subr.mxu0 %v2004_v32 }
 0x21f   :  { %1468 = vmatpush3.msra.mxu0 %v2004_v32 }
 0x220   :  { %1489 = vmatprep.subr.bf16.mxu0 %v1786_v0 }
 0x2d0   :  { %v417_v34 = vpop.f32.mrf.mxu0  ;;  %v497_v35 = vpop.f32.mrf.mxu1 }
 0x2d1   :  { %v498_v36 = vadd.f32 %v1292_v33, %v497_v35  ;;  %v418_v52 = vadd.f32 %v1286_v51, %v417_v34 }
 0x2d2   :  { %v1439_v37 = vpop.f32.mrf.mxu0  ;;  %v1451_v38 = vpop.f32.mrf.mxu1 }
 0x2d3   :  { %v1298_v39 = vmul.f32 -1.442695, %v498_v36 }
 0x2d4   :  { %v420_v40 = vpop.f32.mrf.mxu0  ;;  %v500_v41 = vpop.f32.mrf.mxu1 }
 0x2d5   :  { %1598 = vpow2.f32 %v1298_v39  ;;  %v501_v42 = vadd.f32 %v1292_v33, %v500_v41  ;;  %v421_v55 = vadd.f32 %v1286_v51, %v420_v40  ;;  %v709_v41 = vld [vmem:[#allocation2 + $0x20] sm:$0xff]  ;;  %v708_v51 = vld [vmem:[#allocation2 + $0x18] sm:$0xff] }
 0x2d6   :  { %v1440_v43 = vpop.f32.mrf.mxu0  ;;  %v1452_v44 = vpop.f32.mrf.mxu1 }
 0x2d7   :  { %v1299_v45 = vmul.f32 -1.442695, %v501_v42  ;;  %v714_v42 = vld [vmem:[#allocation5 + $0x28] sm:$0xff] }
 0x2d9   :  { %1600 = vpow2.f32 %v1299_v45  ;;  %v710_v45 = vld [vmem:[#allocation2 + $0x28] sm:$0xff] }
 0x2e2   :  { %v1599_v47 = vpop.eup %1598 }
 0x2e3   :  { %v510_v48 = vadd.f32 1.0, %v1599_v47 }
 0x2e5   :  { %1602 = vrcp.f32 %v510_v48 }
 0x2e6   :  { %v1601_v49 = vpop.eup %1600 }
 0x2e7   :  { %v511_v50 = vadd.f32 1.0, %v1601_v49 }
 0x2e9   :  { %1604 = vrcp.f32 %v511_v50 }
 0x2f2   :  { %v1603_v53 = vpop.eup %1602 }
 0x2f3   :  { %v516_v54 = vmul.f32 %v1603_v53, %v418_v52  ;;  %v712_v52 = vld [vmem:[#allocation5 + $0x18] sm:$0xff] }
 0x2f5   :  { %v518_v56 = vadd.f32 %v516_v54, %v1910_v1 }
 0x2f6   :  { %v1605_v57 = vpop.eup %1604 }
 0x2f7   :  { %1469 = vmatprep.mubr.msk.f32.mxu0 %vm379_vm3, %v518_v56  ;;  %v517_v58 = vmul.f32 %v1605_v57, %v421_v55  ;;  %v520_v60 = vmul.f32 %v518_v56, %v518_v56 }
 0x2f9   :  { %v519_v59 = vadd.f32 %v517_v58, %v1915_v2 }
 0x2fb   :  { %1470 = vmatmul.mubr.msk.f32.vlgmr.msra.gmra.mxu0 %vm379_vm3, %v519_v59  ;;  %v521_v61 = vmul.f32 %v519_v59, %v519_v59 }
 0x2fc   :  { %1472 = vmatprep.mubr.msk.f32.mxu0 %vm379_vm3, %v520_v60 }
 0x2ff   :  { %1473 = vmatmul.mubr.msk.f32.gmra.mxu0 %vm379_vm3, %v521_v61 }
 0x300   :  { %1495 = vmatprep.mubr.msk.bf16.mxu0 %vm1787_vm0, %v1786_v0 }
 0x3bb   :  { %v1471_v62 = vpop.f32.mrf.mxu0 }
 0x3bc   :  { %v620_v1 = vmul.f32 %v1471_v62, %v1471_v62  ;;  %v624_v12 = vsub.f32 %v519_v59, %v1471_v62 }
 0x3bd   :  { %v600_v63 = vpop.f32.mrf.mxu0 }
 0x3be   :  { %v619_v7 = vmul.f32 %v600_v63, %v600_v63  ;;  %v623_v15 = vsub.f32 %v518_v56, %v600_v63 }
 0x3bf   :  { %v1474_v3 = vpop.f32.mrf.mxu0 }
 0x3c0   :  { %v622_v8 = vsub.f32 %v1474_v3, %v620_v1 }
 0x3c1   :  { %v610_v9 = vpop.f32.mrf.mxu0 }
 0x3c2   :  { %v626_v10 = vadd.f32 1e-05, %v622_v8  ;;  %v621_v2 = vsub.f32 %v610_v9, %v619_v7 }
 0x3c4   :  { %1606 = vrsqrt.f32 %v626_v10  ;;  %v625_v11 = vadd.f32 1e-05, %v621_v2  ;;  %v1574_v2 = vld [vmem:[#allocation7 + $0x38] sm:$0xff]  }
 0x3c6   :  { %1608 = vrsqrt.f32 %v625_v11  ;;  %v1575_v11 = vld [vmem:[#allocation8 + $0x38] sm:$0xff]  }
 0x3d1   :  { %v1607_v13 = vpop.eup %1606 }
 0x3d2   :  { %v630_v16 = vmul.f32 %v1607_v13, %v624_v12  ;;  %v1576_v12 = vld [vmem:[#allocation7 + $0x30] sm:$0xff]  }
 0x3d3   :  { %v1609_v17 = vpop.eup %1608  ;;  %v1577_v13 = vld [vmem:[#allocation8 + $0x30] sm:$0xff]  }
 0x3d4   :  { %v629_v18 = vmul.f32 %v1609_v17, %v623_v15  ;;  %v639_v19 = vmul.f32 %v1304_v14, %v630_v16  ;;  %v1580_v15 = vld [vmem:[#allocation7 + $0x20] sm:$0xff]  }
 0x3d5   :  { %v1581_v16 = vld [vmem:[#allocation8 + $0x20] sm:$0xff]  }
 0x3d6   :  { %v638_v21 = vmul.f32 %v1304_v14, %v629_v18  ;;  %v2031_v23 = vadd.f32 %v1305_v20, %v639_v19  ;;  %v1579_v14 = vld [vmem:[#allocation8 + $0x28] sm:$0xff]   ;;  %v1310_v17 = vld [vmem:[%s2116_s5 + $0x1] ss:$0 sm:$0xff] }
 0x3d8   :  { %v2029_v22 = vadd.f32 %v1305_v20, %v638_v21 }
 0x3da   :  { %v649_v24 = vpack.c.bf16 %v2031_v23, %v2029_v22  ;;  %v744_v18 = vmul.f32 %v1310_v17, %v2029_v22 }
 0x3dc   :  { %1476 = vmatpush3.bf16.msra.mxu1 %v649_v24 }
 0x3dd   :  { %1499 = vmatprep.subr.bf16.mxu1 %v1786_v0 }
 0x3df   :  { %1478 = vmatmul.mubr.msk.bf16.vlgmr.msra.gmra.mxu1 %vm168_vm1, %v1922_v4 }
 0x3e0   :  { %1481 = vmatprep.mubr.msk.bf16.mxu1 %vm1787_vm0, %v1786_v0  ;;  %1500 = vmatpush3.bf16.msra.mxu1 %v1574_v2 }
 0x3e1   :  { %1501 = vmatprep.subr.bf16.mxu1 %v1786_v0 }
 0x3e4   :  { %1502 = vmatpush3.bf16.msra.mxu1 %v1576_v12  ;;  %v1582_v12 = vld [vmem:[#allocation11 + $0x30] ss:$8 sps:$4 sm:$0xff]  }
 0x3e5   :  { %1503 = vmatprep.subr.bf16.mxu1 %v1786_v0 }
 0x3e7   :  { %1482 = vmatmul.mubr.msk.bf16.gmra.mxu1 %vm168_vm1, %v1942_v6  ;;  %v713_v6 = vld [vmem:[#allocation5 + $0x20] sm:$0xff] }
 0x3e8   :  { %1485 = vmatprep.mubr.msk.bf16.mxu1 %vm1787_vm0, %v1786_v0 }
 0x3ef   :  { %1486 = vmatmul.mubr.msk.bf16.gmra.mxu1 %vm168_vm1, %v1927_v5 }
 0x3f0   :  { %1507 = vmatprep.mubr.msk.bf16.mxu1 %vm1787_vm0, %v1786_v0 }
 0x49f   :  { %v684_v33 = vpop.f32.mrf.mxu1 }
 0x4a0   :  { %v724_v58 = vmul.f32 %v712_v52, %v684_v33  ;;  %v715_v3 = vmul.f32 %v708_v51, %v684_v33  ;;  %v745_v33 = vmul.f32 %v1310_v17, %v2031_v23  ;;  %v1591_v17 = vld [vmem:[#allocation11] ss:$8 sps:$4 sm:$0xff]  }
 0x4a1   :  { %v1479_v34 = vpop.f32.mrf.mxu1 }
 0x4a3   :  { %v687_v35 = vpop.f32.mrf.mxu1 }
 0x4a4   :  { %v725_v5 = vmul.f32 %v713_v6, %v687_v35  ;;  %v716_v62 = vmul.f32 %v709_v41, %v687_v35 }
 0x4a5   :  { %v1480_v36 = vpop.f32.mrf.mxu1 }
 0x4a7   :  { %v692_v4 = vpop.f32.mrf.mxu1 }
 0x4a8   :  { %v726_v48 = vmul.f32 %v714_v42, %v692_v4  ;;  %v717_v54 = vmul.f32 %v710_v45, %v692_v4 }
 0x4a9   :  { %v1483_v37 = vpop.f32.mrf.mxu1 }
 0x4ab   :  { %v695_v38 = vpop.f32.mrf.mxu1 }
 0x4ac   :  { %v727_v55 = vmul.f32 %v708_v51, %v695_v38  ;;  %v718_v63 = vmul.f32 %v712_v52, %v695_v38 }
 0x4ad   :  { %v1484_v39 = vpop.f32.mrf.mxu1 }
 0x4ae   :  { %v730_v1 = vadd.f32 %v727_v55, %v724_v58  ;;  %v721_v9 = vsub.f32 %v715_v3, %v718_v63 }
 0x4af   :  { %v700_v40 = vpop.f32.mrf.mxu1 }
 0x4b0   :  { %v728_v44 = vmul.f32 %v709_v41, %v700_v40  ;;  %v719_v59 = vmul.f32 %v713_v6, %v700_v40 }
 0x4b1   :  { %v1487_v43 = vpop.f32.mrf.mxu1 }
 0x4b2   :  { %v731_v56 = vadd.f32 %v728_v44, %v725_v5  ;;  %v722_v7 = vsub.f32 %v716_v62, %v719_v59 }
 0x4b3   :  { %v703_v47 = vpop.f32.mrf.mxu1 }
 0x4b4   :  { %v720_v49 = vmul.f32 %v714_v42, %v703_v47  ;;  %v729_v50 = vmul.f32 %v710_v45, %v703_v47  ;;  %v733_v10 = vpack.c.bf16 %v722_v7, %v721_v9 }
 0x4b5   :  { %v1488_v53 = vpop.f32.mrf.mxu1 }
 0x4b6   :  { %v732_v57 = vadd.f32 %v729_v50, %v726_v48  ;;  %v723_v60 = vsub.f32 %v717_v54, %v720_v49 }
 0x4b8   :  { %v735_v61 = vpack.c.bf16 %v732_v57, %v731_v56  ;;  %v734_v8 = vpack.c.bf16 %v730_v1, %v723_v60 }
 0x4ba   :  { %1490 = vmatpush3.bf16.msra.mxu0 %v735_v61  ;;  %v1313_v61 = vld [vmem:[%s2119_s8 + $0x1] ss:$0 sm:$0xff] }
 0x4bb   :  { %1491 = vmatprep.subr.bf16.mxu0 %v1786_v0 }
 0x4be   :  { %1492 = vmatpush3.bf16.msra.mxu0 %v734_v8 }
 0x4bf   :  { %1493 = vmatprep.subr.bf16.mxu0 %v1786_v0 }
 0x4c2   :  { %1494 = vmatpush3.bf16.msra.mxu0 %v733_v10 }
 0x4c3   :  { %1511 = vmatprep.subr.bf16.mxu0 %v1786_v0 }
 0x4c5   :  { %1496 = vmatmul.mubr.msk.bf16.vlgmr.msra.gmra.mxu0 %vm276_vm2, %v1953_v46  ;;  %v1578_v46 = vld [vmem:[#allocation7 + $0x28] sm:$0xff]  }
 0x4c6   :  { %1519 = vmatprep.mubr.msk.bf16.mxu0 %vm1787_vm0, %v1786_v0  ;;  %1512 = vmatpush3.bf16.msra.mxu0 %v1575_v11 }
 0x4c7   :  { %1513 = vmatprep.subr.bf16.mxu0 %v1786_v0  ;;  %1504 = vmatpush3.bf16.msra.mxu1 %v1578_v46  ;;  %v1587_v46 = vld [vmem:[#allocation11 + $0x24] ss:$8 sps:$4 sm:$0xff]  }
 0x4c8   :  { %1505 = vmatprep.subr.bf16.mxu1 %v1786_v0 }
 0x4ca   :  { %1514 = vmatpush3.bf16.msra.mxu0 %v1577_v13  ;;  %v1584_v13 = vld [vmem:[#allocation11 + $0x34] ss:$8 sps:$4 sm:$0xff]  }
 0x4cb   :  { %1515 = vmatprep.subr.bf16.mxu0 %v1786_v0  ;;  %1506 = vmatpush3.bf16.msra.mxu1 %v1580_v15  ;;  %v1590_v15 = vld [vmem:[#allocation11 + $0x14] ss:$8 sps:$4 sm:$0xff]  }
 0x4cc   :  { %1523 = vmatprep.subr.mxu1 %v1976_v25 }
 0x4ce   :  { %1516 = vmatpush3.bf16.msra.mxu0 %v1579_v14  ;;  %v1788_v14 = vmov 0  }
 0x4cf   :  { %1517 = vmatprep.subr.bf16.mxu0 %v1786_v0 }
 0x4d2   :  { %1518 = vmatpush3.bf16.msra.mxu0 %v1581_v16  ;;  %v1593_v16 = vld [vmem:[#allocation11 + $0x4] ss:$8 sps:$4 sm:$0xff]  }
 0x4d3   :  { %1203 = vmatprep.subr.bf16.mxu0 %v1584_v13 }
 0x585   :  { %v780_v19 = vpop.f32.mrf.mxu0 }
 0x586   :  { %v781_v20 = vadd.f32 %v780_v19, %v744_v18 }
 0x587   :  { %v1497_v21 = vpop.f32.mrf.mxu0 }
 0x588   :  { %v789_v24 = vmul.f32 0.044715, %v781_v20  ;;  %v787_v47 = vmul.f32 0.5, %v781_v20 }
 0x589   :  { %v783_v34 = vpop.f32.mrf.mxu0 }
 0x58a   :  { %v791_v0 = vmul.f32 %v789_v24, %v781_v20  ;;  %v784_v35 = vadd.f32 %v783_v34, %v745_v33 }
 0x58b   :  { %v1498_v36 = vpop.f32.mrf.mxu0 }
 0x58c   :  { %v793_v4 = vmul.f32 %v791_v0, %v781_v20  ;;  %v790_v37 = vmul.f32 0.044715, %v784_v35  ;;  %v788_v5 = vmul.f32 0.5, %v784_v35 }
 0x58e   :  { %v795_v38 = vadd.f32 %v793_v4, %v781_v20  ;;  %v792_v39 = vmul.f32 %v790_v37, %v784_v35 }
 0x590   :  { %v797_v40 = vmul.f32 0.7978846, %v795_v38  ;;  %v794_v41 = vmul.f32 %v792_v39, %v784_v35  ;;  %v1333_v38 = vld [vmem:[%s2121_s10 + $0x1] ss:$0 sm:$0xff] }
 0x592   :  { %1610 = vtanh.f32 %v797_v40  ;;  %v796_v6 = vadd.f32 %v794_v41, %v784_v35 }
 0x594   :  { %v798_v42 = vmul.f32 0.7978846, %v796_v6  ;;  %v1335_v6 = vld [vmem:[%s2122_s11 + $0x1] ss:$0 sm:$0xff] }
 0x596   :  { %1612 = vtanh.f32 %v798_v42 }
 0x59f   :  { %v1611_v43 = vpop.eup %1610 }
 0x5a0   :  { %v801_v44 = vadd.f32 1.0, %v1611_v43 }
 0x5a2   :  { %v803_v49 = vmul.f32 %v801_v44, %v787_v47 }
 0x5a3   :  { %v1613_v45 = vpop.eup %1612 }
 0x5a4   :  { %v802_v48 = vadd.f32 1.0, %v1613_v45 }
 0x5a6   :  { %v804_v50 = vmul.f32 %v802_v48, %v788_v5 }
 0x5a8   :  { %v805_v51 = vpack.c.bf16 %v804_v50, %v803_v49 }
 0x5aa   :  { %1508 = vmatmul.mubr.msk.bf16.vlgmr.msra.gmra.mxu1 %vm379_vm3, %v805_v51  ;;  %1520 = vmatmul.mubr.msk.bf16.vlgmr.msra.gmra.mxu0 %vm379_vm3, %v805_v51 }
 0x5ab   :  { %1524 = vmatpush3.msra.mxu1 %v1976_v25  ;;  %v1320_v25 = vld [vmem:[%s2120_s9 + $0x1] ss:$0 sm:$0xff]  ;;  %1204 = vmatpush1.bf16.msra.mxu0 %v1582_v12 }
 0x5ac   :  { %1525 = vmatprep.subr.mxu1 %v1978_v26  ;;  %1227 = vmatprep.mubr.bf16.mxu0 %v1788_v14 }
 0x5ad   :  { %1526 = vmatpush3.msra.mxu1 %v1978_v26  ;;  %1205 = vmatprep.subr.bf16.mxu0 %v1587_v46 }
 0x5ae   :  { %1527 = vmatprep.subr.mxu1 %v1982_v27 }
 0x5af   :  { %1528 = vmatpush3.msra.mxu1 %v1982_v27 }
 0x5b0   :  { %1529 = vmatprep.subr.mxu1 %v1986_v28 }
 0x5b1   :  { %1530 = vmatpush3.msra.mxu1 %v1986_v28 }
 0x5b2   :  { %1531 = vmatprep.subr.mxu1 %v1990_v29 }
 0x5b3   :  { %1532 = vmatpush3.msra.mxu1 %v1990_v29 }
 0x5b4   :  { %1533 = vmatprep.subr.mxu1 %v1994_v30 }
 0x5b5   :  { %1534 = vmatpush3.msra.mxu1 %v1994_v30 }
 0x5b6   :  { %1535 = vmatprep.subr.mxu1 %v1998_v31 }
 0x5b7   :  { %1536 = vmatpush3.msra.mxu1 %v1998_v31 }
 0x5b8   :  { %1537 = vmatprep.subr.mxu1 %v2004_v32 }
 0x5b9   :  { %1538 = vmatpush3.msra.mxu1 %v2004_v32 }
 0x66a   :  { %v884_v26 = vpop.f32.mrf.mxu1  ;;  %v966_v27 = vpop.f32.mrf.mxu0 }
 0x66b   :  { %v967_v28 = vadd.f32 %v1320_v25, %v966_v27  ;;  %v885_v62 = vadd.f32 %v1313_v61, %v884_v26 }
 0x66c   :  { %v1509_v29 = vpop.f32.mrf.mxu1  ;;  %v1521_v52 = vpop.f32.mrf.mxu0 }
 0x66d   :  { %v1326_v53 = vmul.f32 -1.442695, %v967_v28 }
 0x66e   :  { %v887_v54 = vpop.f32.mrf.mxu1  ;;  %v969_v30 = vpop.f32.mrf.mxu0 }
 0x66f   :  { %1614 = vpow2.f32 %v1326_v53  ;;  %v970_v55 = vadd.f32 %v1320_v25, %v969_v30  ;;  %v888_v3 = vadd.f32 %v1313_v61, %v887_v54  ;;  %v1182_v53 = vlaneseq }
 0x670   :  { %v1510_v56 = vpop.f32.mrf.mxu1  ;;  %v1522_v31 = vpop.f32.mrf.mxu0 }
 0x671   :  { %v1327_v57 = vmul.f32 -1.442695, %v970_v55  ;;  %v1183_v54 = vshrl.u32 %v1182_v53, 7  ;;  %v1789_v56 = vmov 1966171168   ;;  %vm1256_vm4 = vcmp.lt.s32.totalorder %v1182_v53, 256 }
 0x672   :  { %v1240_v31 = vunpack.c.l.s4 %v1789_v56 }
 0x673   :  { %1616 = vpow2.f32 %v1327_v57  ;;  %v1184_v30 = vsub.s32 0, %v1183_v54  ;;  %v1188_v55 = vsub.s32 1, %v1183_v54  ;;  %v1140_v57 = vld [vmem:[%s2125_s14] sm:$0x3] }
 0x67c   :  { %v1615_v58 = vpop.eup %1614 }
 0x67d   :  { %v979_v32 = vadd.f32 1.0, %v1615_v58  ;;  %v1185_v58 = vrot.slane %v1140_v57, %v1184_v30 }
 0x67f   :  { %1618 = vrcp.f32 %v979_v32  ;;  %v1189_v32 = vrot.slane %v1140_v57, %v1188_v55 }
 0x680   :  { %v1617_v59 = vpop.eup %1616 }
 0x681   :  { %v980_v60 = vadd.f32 1.0, %v1617_v59  ;;  %v1241_v59 = vunpack.c.0.s8 %v1240_v31 }
 0x683   :  { %1620 = vrcp.f32 %v980_v60 }
 0x68c   :  { %v1619_v63 = vpop.eup %1618 }
 0x68d   :  { %v985_v1 = vmul.f32 %v1619_v63, %v885_v62 }
 0x68f   :  { %v987_v7 = vadd.f32 %v985_v1, %v2029_v22  ;;  %v1585_v22 = vld [vmem:[#allocation11 + $0x20] ss:$8 sps:$4 sm:$0xff]   ;;  %v1244_v1 = vsub.s32 %v1241_v59, %v1183_v54 }
 0x690   :  { %v1621_v8 = vpop.eup %1620  ;;  %1206 = vmatpush1.bf16.msra.mxu0 %v1585_v22 }
 0x691   :  { %1539 = vmatprep.mubr.msk.f32.mxu1 %vm379_vm3, %v987_v7  ;;  %v986_v9 = vmul.f32 %v1621_v8, %v888_v3  ;;  %v989_v2 = vmul.f32 %v987_v7, %v987_v7  ;;  %1207 = vmatprep.subr.bf16.mxu0 %v1590_v15 }
 0x693   :  { %v988_v10 = vadd.f32 %v986_v9, %v2031_v23  ;;  %v1588_v23 = vld [vmem:[#allocation11 + $0x10] ss:$8 sps:$4 sm:$0xff]  }
 0x694   :  { %1208 = vmatpush1.bf16.msra.mxu0 %v1588_v23 }
 0x695   :  { %1540 = vmatmul.mubr.msk.f32.vlgmr.msra.gmra.mxu1 %vm379_vm3, %v988_v10  ;;  %v990_v11 = vmul.f32 %v988_v10, %v988_v10  ;;  %1209 = vmatprep.subr.bf16.mxu0 %v1593_v16 }
 0x696   :  { %1542 = vmatprep.mubr.msk.f32.mxu1 %vm379_vm3, %v989_v2 }
 0x698   :  { %1210 = vmatpush1.bf16.msra.mxu0 %v1591_v17 }
 0x699   :  { %1543 = vmatmul.mubr.msk.f32.gmra.mxu1 %vm379_vm3, %v990_v11 }
 0x755   :  { %v1541_v18 = vpop.f32.mrf.mxu1 }
 0x756   :  { %v1089_v20 = vmul.f32 %v1541_v18, %v1541_v18  ;;  %v1093_v4 = vsub.f32 %v988_v10, %v1541_v18 }
 0x757   :  { %v1069_v19 = vpop.f32.mrf.mxu1 }
 0x758   :  { %v1088_v24 = vmul.f32 %v1069_v19, %v1069_v19  ;;  %v1092_v39 = vsub.f32 %v987_v7, %v1069_v19 }
 0x759   :  { %v1544_v21 = vpop.f32.mrf.mxu1 }
 0x75a   :  { %v1091_v33 = vsub.f32 %v1544_v21, %v1089_v20 }
 0x75b   :  { %v1079_v34 = vpop.f32.mrf.mxu1 }
 0x75c   :  { %v1095_v0 = vadd.f32 1e-05, %v1091_v33  ;;  %v1090_v35 = vsub.f32 %v1079_v34, %v1088_v24 }
 0x75e   :  { %1622 = vrsqrt.f32 %v1095_v0  ;;  %v1094_v36 = vadd.f32 1e-05, %v1090_v35 }
 0x760   :  { %1624 = vrsqrt.f32 %v1094_v36 }
 0x76b   :  { %v1623_v37 = vpop.eup %1622 }
 0x76c   :  { %v1099_v40 = vmul.f32 %v1623_v37, %v1093_v4 }
 0x76d   :  { %v1625_v41 = vpop.eup %1624 }
 0x76e   :  { %v1109_v42 = vmul.f32 %v1333_v38, %v1099_v40  ;;  %v1098_v43 = vmul.f32 %v1625_v41, %v1092_v39 }
 0x770   :  { %v1119_v44 = vadd.f32 %v1335_v6, %v1109_v42  ;;  %v1108_v45 = vmul.f32 %v1333_v38, %v1098_v43 }
 0x772   :  { %v1118_v47 = vadd.f32 %v1335_v6, %v1108_v45  ;;  %v1121_v48 = vsel %vm379_vm3, %v1119_v44, 0.0 }
 0x774   :  { %v1120_v5 = vsel %vm379_vm3, %v1118_v47, 0.0 }
 0x775   :  { %v1122_v49 = vadd.f32 %v1121_v48, %v1120_v5 }
 0x777   :  { %v1123_v50 = vrot.slane %v1122_v49, 4 }
 0x779   :  { %v1124_v51 = vadd.f32 %v1123_v50, %v1122_v49 }
 0x77b   :  { %v1125_v25 = vrot.slane %v1124_v51, 2 }
 0x77d   :  { %v1126_v26 = vadd.f32 %v1125_v25, %v1124_v51 }
 0x77f   :  { %v1127_v27 = vrot.slane %v1126_v26, 1 }
 0x781   :  { %v1128_v28 = vadd.f32 %v1127_v27, %v1126_v26 }
 0x783   :  { %v1130_v29 = vmul.f32 0.0625, %v1128_v28 }
 0x785   :  { %v1131_v52 = vpack.c.bf16 %v1130_v29, %v1130_v29 }
 0x787   :  { %1344 = vmatmul.mubr.msk.bf16.vlgmr.msra.gmra.mxu0 %vm379_vm3, %v1131_v52 }
 0x847   :  { %v1229_v60 = vpop.f32.mrf.mxu0 }
 0x848   :  { %v1230_v62 = vadd.f32 %v1229_v60, %v1185_v58 }
 0x849   :  { %v1231_v61 = vpop.f32.mrf.mxu0 }
 0x84a   :  { %v1232_v63 = vadd.f32 %v1231_v61, %v1189_v32 }
 0x84b   :  { %v1233_v3 = vpop.f32.mrf.mxu0 }
 0x84c   :  { %v1238_v7 = vcombine.low %v1230_v62, %v1232_v63 }
 0x84d   :  { %v1234_v8 = vpop.f32.mrf.mxu0 }
 0x84e   :  { %v1245_v9 = vrot.slane %v1238_v7, %v1244_v1 }
 0x850   :  { %v1252_v10 = vrot.slane %v1245_v9, %v1244_v1 }
 0x852   :  { %1258 = vst.msk [vmem:[#allocation13] sm:$0x3] %vm1256_vm4, %v1252_v10 }
 0x853   :  { %1757 = shalt.err (!%p1754_p6)
}
 0x854   :  { %1268 = dma.vmem_to_hbm [thread:$0]  %s1266_s23, 32, %s2126_s15, [#allocation4]  }
 0x855   :  { %1774 = dma.done.wait [#allocation4], 32  }
 0x856   :  { %1775 = vsyncadd [#allocation4], 4294967264 }
 0x857   :  { %1272 = vsyncpa [#allocation3], 1 }
 0x858   :  { %1273 = vsyncpa [#allocation6], 1 }
 0x859   :  { %1274 = vsyncpa [#allocation9], 1 }
 0x85a   :  { %1275 = vsyncpa [#allocation12], 1 }
 0x85b   :  { %1276 = vsyncpa [#allocation4], 1 }

</bundles_post_ra>
